<compile_context>
chip_gen: v6e
topology: v6e:2x2x1
jax: 0.10.0
libtpu: 0.0.40
codegen_flags: <defaults>
</compile_context>

<pallas_src>
import jax
import jax.numpy as jnp
from jax import lax
from jax.experimental import pallas as pl
from jax.experimental.pallas import tpu as pltpu

LP = 128  # lane width: every channel dimension is carried zero-padded to 128 lanes


def _make_tcn_kernel(B, T, C0, C1, C2, K, offs):
    TB = T * B
    (OFF_W01, OFF_W02, OFF_W11, OFF_W12,
     OFF_W21, OFF_W22, OFF_WLIN, OFF_BIAS) = offs

    def kernel(x_ref, w_ref, o_ref):
        relu = lambda v: jnp.maximum(v, 0.0)
        bias = w_ref[OFF_BIAS:OFF_BIAS + 8, :]                    # [8, LP] packed bias rows

        def shifted(v, s):
            # Causal time shift in registers: out[r] = v[r - s], zeros for r < s.
            # s is a static multiple of B, so batches never mix.
            if s == 0:
                return v
            if s >= TB:
                return jnp.zeros((TB, LP), jnp.float32)
            return jnp.concatenate(
                [jnp.zeros((s, LP), jnp.float32), v[:TB - s, :]], axis=0)

        def fused_conv(v, dil, w_off, b_row):
            # All K taps of one causal dilated conv as a single GEMM:
            #   lane-blocked slab [TB, K*LP]  @  tap-stacked weight [K*LP, LP]
            slab = jnp.concatenate(
                [shifted(v, (K - 1 - k) * dil * B) for k in range(K)], axis=1)
            w = w_ref[w_off:w_off + K * LP, :]
            return (jnp.dot(slab, w, preferred_element_type=jnp.float32)
                    + bias[b_row:b_row + 1, :])

        x = x_ref[...]                                            # [TB, LP]

        # ---- block 0 (dil 1): conv1 in cols [0:C0], fused 1x1 downsample in [C0:2*C0] ----
        f0 = fused_conv(x, 1, OFF_W01, 0)
        h = relu(f0)                    # lanes >= C0 hold relu(ds) junk -> killed by zero W rows
        h2 = relu(fused_conv(h, 1, OFF_W02, 1))                   # clean: cols >= C0 are zero
        res = jnp.concatenate(
            [f0[:, C0:2 * C0], jnp.zeros((TB, LP - C0), jnp.float32)], axis=1)
        y0 = relu(h2 + res)                                       # lanes >= C0 are zero

        # ---- block 1 (dil 2): conv1 in cols [0:C1], fused 1x1 downsample in [C1:2*C1] ----
        f1 = fused_conv(y0, 2, OFF_W11, 2)
        h = relu(f1)
        h2 = relu(fused_conv(h, 2, OFF_W12, 3))
        res = jnp.concatenate(
            [f1[:, C1:2 * C1], jnp.zeros((TB, LP - C1), jnp.float32)], axis=1)
        y1 = relu(h2 + res)

        # ---- block 2 (dil 4): C1 == C2 -> identity residual ----
        h = relu(fused_conv(y1, 4, OFF_W21, 4))
        h2 = relu(fused_conv(h, 4, OFF_W22, 5))
        y2 = relu(h2 + y1)

        # Dropout(0.2) is identity in eval mode.
        # TODO(synk): train-mode dropout masks not implemented (eval-only kernel).

        # ---- Linear on the last time step (last B rows of the time-major layout) ----
        last = y2[(T - 1) * B:TB, :]                              # [B, LP]
        wl = w_ref[OFF_WLIN:OFF_WLIN + LP, :]
        o_ref[...] = (jnp.dot(last, wl, preferred_element_type=jnp.float32)
                      + bias[6:7, :]).astype(o_ref.dtype)

    return kernel


def tcn_model_forward(x, params, num_channels=(32, 64, 64), kernel_size=3):
    """x: [B, input_size, T] float32 (PyTorch Conv1d layout). Returns [B, output_size]."""
    B, I, T = x.shape
    C0, C1, C2 = num_channels
    K = kernel_size
    O = params["w_lin"].shape[0]
    assert C1 == C2 and I != C0 and C0 != C1, "kernel hardcodes the default [32,64,64] block structure"
    assert max(I, 2 * C0, 2 * C1, C2, O) <= LP
    TB = T * B
    f32 = jnp.float32

    # Time-major flattened, 128-lane padded input: row t*B + b  <->  (t, b).
    x2d = jnp.transpose(x, (2, 0, 1)).reshape(TB, I).astype(f32)
    x2d = jnp.concatenate([x2d, jnp.zeros((TB, LP - I), f32)], axis=1)

    # ---- pack EVERY weight & bias into one [*, 128] slab (single DMA) ----
    def conv_block(w, cin, cout, w_ds=None, cds=0):
        # w: [cout, cin, K] -> K row-blocks of LP rows each: rows [0:cin] = W[:,:,k]^T
        blk = jnp.zeros((K * LP, LP), f32)
        wt = jnp.transpose(w.astype(f32), (2, 1, 0))              # [K, cin, cout]
        for k in range(K):
            blk = blk.at[k * LP:k * LP + cin, 0:cout].set(wt[k])
        if w_ds is not None:                                      # 1x1 downsample -> zero-shift tap
            wd = jnp.transpose(w_ds.astype(f32), (2, 1, 0))[0]    # [cin, cds]
            blk = blk.at[(K - 1) * LP:(K - 1) * LP + cin, cout:cout + cds].set(wd)
        return blk

    def lin_block(w, cin, cout):
        blk = jnp.zeros((LP, LP), f32)
        return blk.at[0:cin, 0:cout].set(w.astype(f32).T)

    def bias_row(pairs):
        row = jnp.zeros((LP,), f32)
        for off, b in pairs:
            row = row.at[off:off + b.shape[0]].set(b.astype(f32))
        return row

    blocks = [
        conv_block(params["w0_c1"], I, C0, params["w0_ds"], C0),
        conv_block(params["w0_c2"], C0, C0),
        conv_block(params["w1_c1"], C0, C1, params["w1_ds"], C1),
        conv_block(params["w1_c2"], C1, C1),
        conv_block(params["w2_c1"], C1, C2),
        conv_block(params["w2_c2"], C2, C2),
        lin_block(params["w_lin"], C2, O),
    ]
    bias = jnp.stack([
        bias_row([(0, params["b0_c1"]), (C0, params["b0_ds"])]),
        bias_row([(0, params["b0_c2"])]),
        bias_row([(0, params["b1_c1"]), (C1, params["b1_ds"])]),
        bias_row([(0, params["b1_c2"])]),
        bias_row([(0, params["b2_c1"])]),
        bias_row([(0, params["b2_c2"])]),
        bias_row([(0, params["b_lin"])]),
        jnp.zeros((LP,), f32),
    ])                                                            # [8, LP]

    offs, acc = [], 0
    for blk in blocks:
        offs.append(acc)
        acc += blk.shape[0]
    off_bias = acc
    w_packed = jnp.concatenate(blocks + [bias], axis=0)           # [2440, 128], single input DMA

    kernel = _make_tcn_kernel(B, T, C0, C1, C2, K, tuple(offs) + (off_bias,))

    def full_spec(a):
        zeros = (0,) * a.ndim
        return pl.BlockSpec(a.shape, lambda *_: zeros)

    out = pl.pallas_call(
        kernel,
        out_shape=jax.ShapeDtypeStruct((B, LP), f32),
        grid_spec=pltpu.PrefetchScalarGridSpec(
            num_scalar_prefetch=0,
            grid=(1,),
            in_specs=[full_spec(x2d), full_spec(w_packed)],
            out_specs=pl.BlockSpec((B, LP), lambda *_: (0, 0)),
        ),
        compiler_params=pltpu.CompilerParams(
            # NOTE: at production batch sizes, split the batch over a "parallel"
            # grid axis so both v7x TensorCores are used; at B=2 one TC is right.
            dimension_semantics=("arbitrary",),
            vmem_limit_bytes=32 * 1024 * 1024,
        ),
    )(x2d, w_packed)
    return out[:, :O]                                             # drop lane padding


def tcn_reference(x, params, num_channels=(32, 64, 64), kernel_size=3):
    """Pure-JAX reference (mirrors PyTorch eval forward) for a correctness check."""
    P = lax.Precision.HIGHEST

    def cconv(h, w, b, d):
        pad = (kernel_size - 1) * d
        y = lax.conv_general_dilated(h, w, window_strides=(1,), padding=[(pad, 0)],
                                     rhs_dilation=(d,),
                                     dimension_numbers=("NCH", "OIH", "NCH"), precision=P)
        return y + b[None, :, None]

    def pconv(h, w, b):
        y = lax.conv_general_dilated(h, w, window_strides=(1,), padding=[(0, 0)],
                                     dimension_numbers=("NCH", "OIH", "NCH"), precision=P)
        return y + b[None, :, None]

    relu = lambda v: jnp.maximum(v, 0.0)
    h = relu(cconv(x, params["w0_c1"], params["b0_c1"], 1))
    h = relu(cconv(h, params["w0_c2"], params["b0_c2"], 1))
    y0 = relu(h + pconv(x, params["w0_ds"], params["b0_ds"]))
    h = relu(cconv(y0, params["w1_c1"], params["b1_c1"], 2))
    h = relu(cconv(h, params["w1_c2"], params["b1_c2"], 2))
    y1 = relu(h + pconv(y0, params["w1_ds"], params["b1_ds"]))
    h = relu(cconv(y1, params["w2_c1"], params["b2_c1"], 4))
    h = relu(cconv(h, params["w2_c2"], params["b2_c2"], 4))
    y2 = relu(h + y1)
    return jnp.dot(y2[:, :, -1], params["w_lin"].T, precision=P) + params["b_lin"]


def init_params(key, input_size, output_size, num_channels=(32, 64, 64), kernel_size=3):
    """Deterministic PyTorch-style uniform(-1/sqrt(fan_in), 1/sqrt(fan_in)) init."""
    C0, C1, C2 = num_channels
    K = kernel_size
    keys = iter(jax.random.split(key, 32))

    def u(shape, fan_in):
        bound = 1.0 / (float(fan_in) ** 0.5)
        return jax.random.uniform(next(keys), shape, jnp.float32, -bound, bound)

    def conv(cin, cout, k):
        fan = cin * k
        return u((cout, cin, k), fan), u((cout,), fan)

    p = {}
    p["w0_c1"], p["b0_c1"] = conv(input_size, C0, K)
    p["w0_c2"], p["b0_c2"] = conv(C0, C0, K)
    p["w0_ds"], p["b0_ds"] = conv(input_size, C0, 1)
    p["w1_c1"], p["b1_c1"] = conv(C0, C1, K)
    p["w1_c2"], p["b1_c2"] = conv(C1, C1, K)
    p["w1_ds"], p["b1_ds"] = conv(C0, C1, 1)
    p["w2_c1"], p["b2_c1"] = conv(C1, C2, K)
    p["w2_c2"], p["b2_c2"] = conv(C2, C2, K)
    p["w_lin"] = u((output_size, C2), C2)
    p["b_lin"] = u((output_size,), C2)
    return p


if __name__ == "__main__":
    B, I, T, O = 2, 4, 16, 3
    num_channels = (32, 64, 64)

    key = jax.random.PRNGKey(0)
    k_x, k_p = jax.random.split(key)
    x = jax.random.normal(k_x, (B, I, T), jnp.float32)        # [batch, input_size, seq]
    params = init_params(k_p, input_size=I, output_size=O, num_channels=num_channels)

    out = tcn_model_forward(x, params, num_channels=num_channels)
    out = jax.block_until_ready(out)
    assert out.shape == (B, O)

    ref = jax.block_until_ready(tcn_reference(x, params, num_channels=num_channels))
    max_err = float(jnp.max(jnp.abs(out - ref)))
    assert max_err < 1e-2, f"kernel vs reference mismatch: max abs err = {max_err}"

    print("KERNEL_OK")
</pallas_src>

<mosaic_0001>
module attributes {stable_mosaic.version = 11 : i64} {
  func.func @kernel(%arg0: i32, %arg1: memref<32x128xf32, #tpu.memory_space<vmem>>, %arg2: memref<2440x128xf32, #tpu.memory_space<vmem>>, %arg3: memref<2x128xf32, #tpu.memory_space<vmem>>) attributes {dimension_semantics = [#tpu.dimension_semantics<arbitrary>], iteration_bounds = array<i64: 1>, scalar_prefetch = 0 : i64, scratch_operands = 0 : i64, tpu.core_type = #tpu.core_type<tc>, window_params = [{pipeline_mode = #tpu.pipeline_mode<synchronous>, transform_indices = @transform_0, window_bounds = array<i64: 32, 128>}, {pipeline_mode = #tpu.pipeline_mode<synchronous>, transform_indices = @transform_1, window_bounds = array<i64: 2440, 128>}, {pipeline_mode = #tpu.pipeline_mode<synchronous>, transform_indices = @transform_2, window_bounds = array<i64: 2, 128>}]} {
    %c2432 = arith.constant 2432 : index
    %c0 = arith.constant 0 : index
    %0 = vector.load %arg2[%c2432, %c0] : memref<2440x128xf32, #tpu.memory_space<vmem>>, vector<8x128xf32>
    %c0_0 = arith.constant 0 : index
    %c0_1 = arith.constant 0 : index
    %1 = vector.load %arg1[%c0_0, %c0_1] : memref<32x128xf32, #tpu.memory_space<vmem>>, vector<32x128xf32>
    %cst = arith.constant 0.000000e+00 : f32
    %2 = vector.broadcast %cst : f32 to vector<4x128xf32>
    %3 = vector.extract_strided_slice %1 {offsets = [0, 0], sizes = [28, 128], strides = [1, 1]} : vector<32x128xf32> to vector<28x128xf32>
    %4 = tpu.concatenate %2, %3 in 0 : vector<4x128xf32>, vector<28x128xf32> -> vector<32x128xf32>
    %cst_2 = arith.constant 0.000000e+00 : f32
    %5 = vector.broadcast %cst_2 : f32 to vector<2x128xf32>
    %6 = vector.extract_strided_slice %1 {offsets = [0, 0], sizes = [30, 128], strides = [1, 1]} : vector<32x128xf32> to vector<30x128xf32>
    %7 = tpu.concatenate %5, %6 in 0 : vector<2x128xf32>, vector<30x128xf32> -> vector<32x128xf32>
    %8 = tpu.concatenate %4, %7, %1 in 1 : vector<32x128xf32>, vector<32x128xf32>, vector<32x128xf32> -> vector<32x384xf32>
    %c0_3 = arith.constant 0 : index
    %c0_4 = arith.constant 0 : index
    %9 = vector.load %arg2[%c0_3, %c0_4] : memref<2440x128xf32, #tpu.memory_space<vmem>>, vector<384x128xf32>
    %cst_5 = arith.constant dense<0.000000e+00> : vector<32x128xf32>
    %10 = tpu.matmul %8, %9, %cst_5 {dimension_numbers = #tpu.dot_dimension_numbers<[1], [0], [0], [1], [0, 0, 1, 1], [], []>} : vector<32x384xf32>, vector<384x128xf32>, vector<32x128xf32> -> vector<32x128xf32>
    %11 = vector.extract_strided_slice %0 {offsets = [0, 0], sizes = [1, 128], strides = [1, 1]} : vector<8x128xf32> to vector<1x128xf32>
    %12 = vector.broadcast %11 : vector<1x128xf32> to vector<32x128xf32>
    %13 = arith.addf %10, %12 : vector<32x128xf32>
    %cst_6 = arith.constant 0.000000e+00 : f32
    %14 = vector.broadcast %cst_6 : f32 to vector<32x128xf32>
    %15 = arith.maximumf %13, %14 : vector<32x128xf32>
    %cst_7 = arith.constant 0.000000e+00 : f32
    %16 = vector.broadcast %cst_7 : f32 to vector<4x128xf32>
    %17 = vector.extract_strided_slice %15 {offsets = [0, 0], sizes = [28, 128], strides = [1, 1]} : vector<32x128xf32> to vector<28x128xf32>
    %18 = tpu.concatenate %16, %17 in 0 : vector<4x128xf32>, vector<28x128xf32> -> vector<32x128xf32>
    %cst_8 = arith.constant 0.000000e+00 : f32
    %19 = vector.broadcast %cst_8 : f32 to vector<2x128xf32>
    %20 = vector.extract_strided_slice %15 {offsets = [0, 0], sizes = [30, 128], strides = [1, 1]} : vector<32x128xf32> to vector<30x128xf32>
    %21 = tpu.concatenate %19, %20 in 0 : vector<2x128xf32>, vector<30x128xf32> -> vector<32x128xf32>
    %22 = tpu.concatenate %18, %21, %15 in 1 : vector<32x128xf32>, vector<32x128xf32>, vector<32x128xf32> -> vector<32x384xf32>
    %c384 = arith.constant 384 : index
    %c0_9 = arith.constant 0 : index
    %23 = vector.load %arg2[%c384, %c0_9] : memref<2440x128xf32, #tpu.memory_space<vmem>>, vector<384x128xf32>
    %cst_10 = arith.constant dense<0.000000e+00> : vector<32x128xf32>
    %24 = tpu.matmul %22, %23, %cst_10 {dimension_numbers = #tpu.dot_dimension_numbers<[1], [0], [0], [1], [0, 0, 1, 1], [], []>} : vector<32x384xf32>, vector<384x128xf32>, vector<32x128xf32> -> vector<32x128xf32>
    %25 = vector.extract_strided_slice %0 {offsets = [1, 0], sizes = [1, 128], strides = [1, 1]} : vector<8x128xf32> to vector<1x128xf32>
    %26 = vector.broadcast %25 : vector<1x128xf32> to vector<32x128xf32>
    %27 = arith.addf %24, %26 : vector<32x128xf32>
    %cst_11 = arith.constant 0.000000e+00 : f32
    %28 = vector.broadcast %cst_11 : f32 to vector<32x128xf32>
    %29 = arith.maximumf %27, %28 : vector<32x128xf32>
    %30 = vector.extract_strided_slice %13 {offsets = [0, 32], sizes = [32, 32], strides = [1, 1]} : vector<32x128xf32> to vector<32x32xf32>
    %cst_12 = arith.constant 0.000000e+00 : f32
    %31 = vector.broadcast %cst_12 : f32 to vector<32x96xf32>
    %32 = tpu.concatenate %30, %31 in 1 : vector<32x32xf32>, vector<32x96xf32> -> vector<32x128xf32>
    %33 = arith.addf %29, %32 : vector<32x128xf32>
    %cst_13 = arith.constant 0.000000e+00 : f32
    %34 = vector.broadcast %cst_13 : f32 to vector<32x128xf32>
    %35 = arith.maximumf %33, %34 : vector<32x128xf32>
    %cst_14 = arith.constant 0.000000e+00 : f32
    %36 = vector.broadcast %cst_14 : f32 to vector<8x128xf32>
    %37 = vector.extract_strided_slice %35 {offsets = [0, 0], sizes = [24, 128], strides = [1, 1]} : vector<32x128xf32> to vector<24x128xf32>
    %38 = tpu.concatenate %36, %37 in 0 : vector<8x128xf32>, vector<24x128xf32> -> vector<32x128xf32>
    %cst_15 = arith.constant 0.000000e+00 : f32
    %39 = vector.broadcast %cst_15 : f32 to vector<4x128xf32>
    %40 = vector.extract_strided_slice %35 {offsets = [0, 0], sizes = [28, 128], strides = [1, 1]} : vector<32x128xf32> to vector<28x128xf32>
    %41 = tpu.concatenate %39, %40 in 0 : vector<4x128xf32>, vector<28x128xf32> -> vector<32x128xf32>
    %42 = tpu.concatenate %38, %41, %35 in 1 : vector<32x128xf32>, vector<32x128xf32>, vector<32x128xf32> -> vector<32x384xf32>
    %c768 = arith.constant 768 : index
    %c0_16 = arith.constant 0 : index
    %43 = vector.load %arg2[%c768, %c0_16] : memref<2440x128xf32, #tpu.memory_space<vmem>>, vector<384x128xf32>
    %cst_17 = arith.constant dense<0.000000e+00> : vector<32x128xf32>
    %44 = tpu.matmul %42, %43, %cst_17 {dimension_numbers = #tpu.dot_dimension_numbers<[1], [0], [0], [1], [0, 0, 1, 1], [], []>} : vector<32x384xf32>, vector<384x128xf32>, vector<32x128xf32> -> vector<32x128xf32>
    %45 = vector.extract_strided_slice %0 {offsets = [2, 0], sizes = [1, 128], strides = [1, 1]} : vector<8x128xf32> to vector<1x128xf32>
    %46 = vector.broadcast %45 : vector<1x128xf32> to vector<32x128xf32>
    %47 = arith.addf %44, %46 : vector<32x128xf32>
    %cst_18 = arith.constant 0.000000e+00 : f32
    %48 = vector.broadcast %cst_18 : f32 to vector<32x128xf32>
    %49 = arith.maximumf %47, %48 : vector<32x128xf32>
    %cst_19 = arith.constant 0.000000e+00 : f32
    %50 = vector.broadcast %cst_19 : f32 to vector<8x128xf32>
    %51 = vector.extract_strided_slice %49 {offsets = [0, 0], sizes = [24, 128], strides = [1, 1]} : vector<32x128xf32> to vector<24x128xf32>
    %52 = tpu.concatenate %50, %51 in 0 : vector<8x128xf32>, vector<24x128xf32> -> vector<32x128xf32>
    %cst_20 = arith.constant 0.000000e+00 : f32
    %53 = vector.broadcast %cst_20 : f32 to vector<4x128xf32>
    %54 = vector.extract_strided_slice %49 {offsets = [0, 0], sizes = [28, 128], strides = [1, 1]} : vector<32x128xf32> to vector<28x128xf32>
    %55 = tpu.concatenate %53, %54 in 0 : vector<4x128xf32>, vector<28x128xf32> -> vector<32x128xf32>
    %56 = tpu.concatenate %52, %55, %49 in 1 : vector<32x128xf32>, vector<32x128xf32>, vector<32x128xf32> -> vector<32x384xf32>
    %c1152 = arith.constant 1152 : index
    %c0_21 = arith.constant 0 : index
    %57 = vector.load %arg2[%c1152, %c0_21] : memref<2440x128xf32, #tpu.memory_space<vmem>>, vector<384x128xf32>
    %cst_22 = arith.constant dense<0.000000e+00> : vector<32x128xf32>
    %58 = tpu.matmul %56, %57, %cst_22 {dimension_numbers = #tpu.dot_dimension_numbers<[1], [0], [0], [1], [0, 0, 1, 1], [], []>} : vector<32x384xf32>, vector<384x128xf32>, vector<32x128xf32> -> vector<32x128xf32>
    %59 = vector.extract_strided_slice %0 {offsets = [3, 0], sizes = [1, 128], strides = [1, 1]} : vector<8x128xf32> to vector<1x128xf32>
    %60 = vector.broadcast %59 : vector<1x128xf32> to vector<32x128xf32>
    %61 = arith.addf %58, %60 : vector<32x128xf32>
    %cst_23 = arith.constant 0.000000e+00 : f32
    %62 = vector.broadcast %cst_23 : f32 to vector<32x128xf32>
    %63 = arith.maximumf %61, %62 : vector<32x128xf32>
    %64 = vector.extract_strided_slice %47 {offsets = [0, 64], sizes = [32, 64], strides = [1, 1]} : vector<32x128xf32> to vector<32x64xf32>
    %cst_24 = arith.constant 0.000000e+00 : f32
    %65 = vector.broadcast %cst_24 : f32 to vector<32x64xf32>
    %66 = tpu.concatenate %64, %65 in 1 : vector<32x64xf32>, vector<32x64xf32> -> vector<32x128xf32>
    %67 = arith.addf %63, %66 : vector<32x128xf32>
    %cst_25 = arith.constant 0.000000e+00 : f32
    %68 = vector.broadcast %cst_25 : f32 to vector<32x128xf32>
    %69 = arith.maximumf %67, %68 : vector<32x128xf32>
    %cst_26 = arith.constant 0.000000e+00 : f32
    %70 = vector.broadcast %cst_26 : f32 to vector<16x128xf32>
    %71 = vector.extract_strided_slice %69 {offsets = [0, 0], sizes = [16, 128], strides = [1, 1]} : vector<32x128xf32> to vector<16x128xf32>
    %72 = tpu.concatenate %70, %71 in 0 : vector<16x128xf32>, vector<16x128xf32> -> vector<32x128xf32>
    %cst_27 = arith.constant 0.000000e+00 : f32
    %73 = vector.broadcast %cst_27 : f32 to vector<8x128xf32>
    %74 = vector.extract_strided_slice %69 {offsets = [0, 0], sizes = [24, 128], strides = [1, 1]} : vector<32x128xf32> to vector<24x128xf32>
    %75 = tpu.concatenate %73, %74 in 0 : vector<8x128xf32>, vector<24x128xf32> -> vector<32x128xf32>
    %76 = tpu.concatenate %72, %75, %69 in 1 : vector<32x128xf32>, vector<32x128xf32>, vector<32x128xf32> -> vector<32x384xf32>
    %c1536 = arith.constant 1536 : index
    %c0_28 = arith.constant 0 : index
    %77 = vector.load %arg2[%c1536, %c0_28] : memref<2440x128xf32, #tpu.memory_space<vmem>>, vector<384x128xf32>
    %cst_29 = arith.constant dense<0.000000e+00> : vector<32x128xf32>
    %78 = tpu.matmul %76, %77, %cst_29 {dimension_numbers = #tpu.dot_dimension_numbers<[1], [0], [0], [1], [0, 0, 1, 1], [], []>} : vector<32x384xf32>, vector<384x128xf32>, vector<32x128xf32> -> vector<32x128xf32>
    %79 = vector.extract_strided_slice %0 {offsets = [4, 0], sizes = [1, 128], strides = [1, 1]} : vector<8x128xf32> to vector<1x128xf32>
    %80 = vector.broadcast %79 : vector<1x128xf32> to vector<32x128xf32>
    %81 = arith.addf %78, %80 : vector<32x128xf32>
    %cst_30 = arith.constant 0.000000e+00 : f32
    %82 = vector.broadcast %cst_30 : f32 to vector<32x128xf32>
    %83 = arith.maximumf %81, %82 : vector<32x128xf32>
    %cst_31 = arith.constant 0.000000e+00 : f32
    %84 = vector.broadcast %cst_31 : f32 to vector<16x128xf32>
    %85 = vector.extract_strided_slice %83 {offsets = [0, 0], sizes = [16, 128], strides = [1, 1]} : vector<32x128xf32> to vector<16x128xf32>
    %86 = tpu.concatenate %84, %85 in 0 : vector<16x128xf32>, vector<16x128xf32> -> vector<32x128xf32>
    %cst_32 = arith.constant 0.000000e+00 : f32
    %87 = vector.broadcast %cst_32 : f32 to vector<8x128xf32>
    %88 = vector.extract_strided_slice %83 {offsets = [0, 0], sizes = [24, 128], strides = [1, 1]} : vector<32x128xf32> to vector<24x128xf32>
    %89 = tpu.concatenate %87, %88 in 0 : vector<8x128xf32>, vector<24x128xf32> -> vector<32x128xf32>
    %90 = tpu.concatenate %86, %89, %83 in 1 : vector<32x128xf32>, vector<32x128xf32>, vector<32x128xf32> -> vector<32x384xf32>
    %c1920 = arith.constant 1920 : index
    %c0_33 = arith.constant 0 : index
    %91 = vector.load %arg2[%c1920, %c0_33] : memref<2440x128xf32, #tpu.memory_space<vmem>>, vector<384x128xf32>
    %cst_34 = arith.constant dense<0.000000e+00> : vector<32x128xf32>
    %92 = tpu.matmul %90, %91, %cst_34 {dimension_numbers = #tpu.dot_dimension_numbers<[1], [0], [0], [1], [0, 0, 1, 1], [], []>} : vector<32x384xf32>, vector<384x128xf32>, vector<32x128xf32> -> vector<32x128xf32>
    %93 = vector.extract_strided_slice %0 {offsets = [5, 0], sizes = [1, 128], strides = [1, 1]} : vector<8x128xf32> to vector<1x128xf32>
    %94 = vector.broadcast %93 : vector<1x128xf32> to vector<32x128xf32>
    %95 = arith.addf %92, %94 : vector<32x128xf32>
    %cst_35 = arith.constant 0.000000e+00 : f32
    %96 = vector.broadcast %cst_35 : f32 to vector<32x128xf32>
    %97 = arith.maximumf %95, %96 : vector<32x128xf32>
    %98 = arith.addf %97, %69 : vector<32x128xf32>
    %cst_36 = arith.constant 0.000000e+00 : f32
    %99 = vector.broadcast %cst_36 : f32 to vector<32x128xf32>
    %100 = arith.maximumf %98, %99 : vector<32x128xf32>
    %101 = vector.extract_strided_slice %100 {offsets = [30, 0], sizes = [2, 128], strides = [1, 1]} : vector<32x128xf32> to vector<2x128xf32>
    %c2304 = arith.constant 2304 : index
    %c0_37 = arith.constant 0 : index
    %102 = vector.load %arg2[%c2304, %c0_37] : memref<2440x128xf32, #tpu.memory_space<vmem>>, vector<128x128xf32>
    %cst_38 = arith.constant dense<0.000000e+00> : vector<2x128xf32>
    %103 = tpu.matmul %101, %102, %cst_38 {dimension_numbers = #tpu.dot_dimension_numbers<[1], [0], [0], [1], [0, 0, 1, 1], [], []>} : vector<2x128xf32>, vector<128x128xf32>, vector<2x128xf32> -> vector<2x128xf32>
    %104 = vector.extract_strided_slice %0 {offsets = [6, 0], sizes = [1, 128], strides = [1, 1]} : vector<8x128xf32> to vector<1x128xf32>
    %105 = vector.broadcast %104 : vector<1x128xf32> to vector<2x128xf32>
    %106 = arith.addf %103, %105 : vector<2x128xf32>
    %c0_39 = arith.constant 0 : index
    %c0_40 = arith.constant 0 : index
    %107 = vector.load %arg3[%c0_39, %c0_40] : memref<2x128xf32, #tpu.memory_space<vmem>>, vector<2x128xf32>
    tpu.vector_store %arg3[%c0_39, %c0_40], %106 {strides = array<i32>} : memref<2x128xf32, #tpu.memory_space<vmem>>, vector<2x128xf32>,
    return
  }
  func.func @transform_0(%arg0: i32) -> (i32, i32) {
    %c0_i32 = arith.constant 0 : i32
    %c0_i32_0 = arith.constant 0 : i32
    %c0_i32_1 = arith.constant 0 : i32
    return %c0_i32, %c0_i32_0 : i32, i32
  }
  func.func @transform_1(%arg0: i32) -> (i32, i32) {
    %c0_i32 = arith.constant 0 : i32
    %c0_i32_0 = arith.constant 0 : i32
    %c0_i32_1 = arith.constant 0 : i32
    return %c0_i32, %c0_i32_0 : i32, i32
  }
  func.func @transform_2(%arg0: i32) -> (i32, i32) {
    %c0_i32 = arith.constant 0 : i32
    %c0_i32_0 = arith.constant 0 : i32
    %c0_i32_1 = arith.constant 0 : i32
    return %c0_i32, %c0_i32_0 : i32, i32
  }
}

</mosaic_0001>

<bundles_post_ra>
// kernel: tpu_custom_call.1
= control target key start
LH: loop header
LB: loop body
LE: loop exit
PB: predicated region body
PF: predicated region fallthrough
CT: control target
= control target key end

     0   :  { %7 = vsyncpa [#allocation3], 0  ;;  %s2549_s0 = inlined_call_operand.hbm [shape: f32[32,128], index: 0, kind: input, shape index: {}]   ;;  %s2550_s1 = inlined_call_operand.hbm [shape: f32[2440,128], index: 1, kind: input, shape index: {}]   ;;  %s2551_s2 = inlined_call_operand.hbm [shape: f32[2,128], index: 2, kind: output, shape index: {}]  }
   0x1   :  { %8 = vsyncpa [#allocation6], 0 }
   0x2   :  { %9 = vsyncpa [#allocation4], 0  ;;  %s2404_s9 = smov [#allocation2]  }
   0x3   :  { %s15_s10 = sshll.u32 %s2404_s9, 4  ;;  %s16_s10 = int_to_ptr.vmem [resolvable:$true] %s15_s10 }
   0x4   :  { %s2346_s11 = scalar_lea.vmem %s16_s10, 512  ;;  %p2351_p1 = scmp.lt.s32.totalorder %s16_s10, %s16_s10 }
   0x5   :  { %p2347_p0 = scmp.ne.s32.totalorder %s16_s10, %s2346_s11  ;;  %p2352_p2 = scmp.lt.s32.totalorder %s2346_s11, %s2346_s11 }
   0x7   :  { %p2353_p3 = por %p2352_p2, %p2351_p1 }
   0x9   :  { %p2354_p4 = pnand %p2353_p3, %p2347_p0 }
   0xb   :  { %2357 = shalt.err (!%p2354_p4)
}
   0xc   :  { %s2405_s12 = smov 128   ;;  %s2406_s13 = smov 8  }
   0xd   :  { %21 = dma.hbm_to_vmem [thread:$0]  %s2549_s0, 512, %s16_s10, [#allocation3], %s2405_s12, %s2405_s12, %s2406_s13  }
   0xe   :  { %s2407_s16 = smov [#allocation5]  }
   0xf   :  { %s27_s17 = sshll.u32 %s2407_s16, 4  ;;  %s28_s17 = int_to_ptr.vmem [resolvable:$true] %s27_s17 }
  0x10   :  { %s2366_s18 = scalar_lea.vmem %s28_s17, 39040  ;;  %p2371_p6 = scmp.lt.s32.totalorder %s28_s17, %s28_s17 }
  0x11   :  { %p2367_p5 = scmp.ne.s32.totalorder %s28_s17, %s2366_s18  ;;  %p2372_p7 = scmp.lt.s32.totalorder %s2366_s18, %s2366_s18 }
  0x13   :  { %p2373_p8 = por %p2372_p7, %p2371_p6 }
  0x15   :  { %p2374_p9 = pnand %p2373_p8, %p2367_p5 }
  0x17   :  { %2377 = shalt.err (!%p2374_p9)
}
  0x18   :  { %33 = dma.hbm_to_vmem [thread:$0]  %s2550_s1, 39040, %s28_s17, [#allocation6], %s2405_s12, %s2405_s12, %s2406_s13  }
  0x19   :  { %2398 = dma.done.wait [#allocation3], 512  }
  0x1a   :  { %2399 = vsyncadd [#allocation3], 4294966784 }
  0x1b   :  { %2400 = dma.done.wait [#allocation6], 39040  }
  0x1c   :  { %2401 = vsyncadd [#allocation6], 4294928256  ;;  %v106_v0 = vld [vmem:[#allocation5 + $0xf8] sm:$0xff]  ;;  %v105_v2 = vld [vmem:[#allocation5 + $0xf0] sm:$0xff]  ;;  %vm62_vm0 = vcmask 1041408   ;;  %vm49_vm2 = vcmask 1043456  }
  0x1d   :  { %v90_v1 = vld [vmem:[#allocation5 + $0x78] sm:$0xff]  ;;  %1664 = vmatprep.subr.mxu0 %v106_v0  ;;  %v89_v3 = vld [vmem:[#allocation5 + $0x70] sm:$0xff]  ;;  %v104_v5 = vld [vmem:[#allocation5 + $0xe8] sm:$0xff]  ;;  %s2408_s0 = smov 96   ;;  %vm571_vm4 = vcmask 261120   ;;  %s2410_s1 = smov 64  }
  0x1e   :  { %v122_v4 = vld [vmem:[#allocation5 + $0x178] sm:$0xff]  ;;  %1665 = vmatpush3.msra.mxu0 %v90_v1  ;;  %v121_v6 = vld [vmem:[#allocation5 + $0x170] sm:$0xff]  ;;  %v88_v7 = vld [vmem:[#allocation5 + $0x68] sm:$0xff]  ;;  %vm1084_vm5 = vcmask 523264   ;;  %vm2411_vm6 = vmmov 0   ;;  %s2412_s21 = smov [#allocation7]  }
  0x1f   :  { %2065 = vmatprep.subr.mxu1 %v122_v4  ;;  %1666 = vmatprep.subr.mxu0 %v105_v2  ;;  %v120_v8 = vld [vmem:[#allocation5 + $0x168] sm:$0xff]  ;;  %v103_v9 = vld [vmem:[#allocation5 + $0xe0] sm:$0xff]  ;;  %v102_v12 = vld [vmem:[#allocation5 + $0xd8] sm:$0xff]  ;;  %s1642_s22 = sshll.u32 %s2412_s21, 4  ;;  %s1643_s22 = int_to_ptr.vmem [resolvable:$true] %s1642_s22 }
  0x20   :  { %2066 = vmatpush3.msra.mxu1 %v122_v4  ;;  %1667 = vmatpush3.msra.mxu0 %v89_v3  ;;  %v87_v10 = vld [vmem:[#allocation5 + $0x60] sm:$0xff]  ;;  %v86_v13 = vld [vmem:[#allocation5 + $0x58] sm:$0xff]  ;;  %v101_v15 = vld [vmem:[#allocation5 + $0xd0] sm:$0xff]  ;;  %s2378_s23 = scalar_lea.vmem %s1643_s22, 32  ;;  %p2383_p11 = scmp.lt.s32.totalorder %s1643_s22, %s1643_s22 }
  0x21   :  { %2067 = vmatprep.subr.mxu1 %v121_v6  ;;  %1668 = vmatprep.subr.mxu0 %v104_v5  ;;  %v119_v11 = vld [vmem:[#allocation5 + $0x160] sm:$0xff]  ;;  %v118_v14 = vld [vmem:[#allocation5 + $0x158] sm:$0xff]  ;;  %v85_v16 = vld [vmem:[#allocation5 + $0x50] sm:$0xff]  ;;  %p2379_p10 = scmp.ne.s32.totalorder %s1643_s22, %s2378_s23  ;;  %p2384_p12 = scmp.lt.s32.totalorder %s2378_s23, %s2378_s23 }
  0x22   :  { %2068 = vmatpush3.msra.mxu1 %v121_v6  ;;  %1669 = vmatpush3.msra.mxu0 %v88_v7  ;;  %v117_v17 = vld [vmem:[#allocation5 + $0x150] sm:$0xff]  ;;  %v100_v18 = vld [vmem:[#allocation5 + $0xc8] sm:$0xff]  ;;  %v99_v21 = vld [vmem:[#allocation5 + $0xc0] sm:$0xff] }
  0x23   :  { %2069 = vmatprep.subr.mxu1 %v120_v8  ;;  %1670 = vmatprep.subr.mxu0 %v103_v9  ;;  %v84_v19 = vld [vmem:[#allocation5 + $0x48] sm:$0xff]  ;;  %v83_v22 = vld [vmem:[#allocation5 + $0x40] sm:$0xff]  ;;  %v98_v24 = vld [vmem:[#allocation5 + $0xb8] sm:$0xff]  ;;  %p2385_p13 = por %p2384_p12, %p2383_p11 }
  0x24   :  { %2070 = vmatpush3.msra.mxu1 %v120_v8  ;;  %1671 = vmatpush3.msra.mxu0 %v87_v10  ;;  %v116_v20 = vld [vmem:[#allocation5 + $0x148] sm:$0xff]  ;;  %v115_v23 = vld [vmem:[#allocation5 + $0x140] sm:$0xff]  ;;  %v82_v25 = vld [vmem:[#allocation5 + $0x38] sm:$0xff] }
  0x25   :  { %2071 = vmatprep.subr.mxu1 %v119_v11  ;;  %1672 = vmatprep.subr.mxu0 %v102_v12  ;;  %v114_v26 = vld [vmem:[#allocation5 + $0x138] sm:$0xff]  ;;  %v97_v27 = vld [vmem:[#allocation5 + $0xb0] sm:$0xff]  ;;  %v96_v30 = vld [vmem:[#allocation5 + $0xa8] sm:$0xff]  ;;  %p2386_p0 = pnand %p2385_p13, %p2379_p10 }
  0x26   :  { %2072 = vmatpush3.msra.mxu1 %v119_v11  ;;  %1673 = vmatpush3.msra.mxu0 %v86_v13  ;;  %v81_v28 = vld [vmem:[#allocation5 + $0x30] sm:$0xff]  ;;  %v80_v31 = vld [vmem:[#allocation5 + $0x28] sm:$0xff]  ;;  %v95_v33 = vld [vmem:[#allocation5 + $0xa0] sm:$0xff] }
  0x27   :  { %2073 = vmatprep.subr.mxu1 %v118_v14  ;;  %1674 = vmatprep.subr.mxu0 %v101_v15  ;;  %v113_v29 = vld [vmem:[#allocation5 + $0x130] sm:$0xff]  ;;  %v112_v32 = vld [vmem:[#allocation5 + $0x128] sm:$0xff]  ;;  %v79_v34 = vld [vmem:[#allocation5 + $0x20] sm:$0xff] }
  0x28   :  { %2074 = vmatpush3.msra.mxu1 %v118_v14  ;;  %1675 = vmatpush3.msra.mxu0 %v85_v16  ;;  %v111_v35 = vld [vmem:[#allocation5 + $0x120] sm:$0xff]  ;;  %v94_v36 = vld [vmem:[#allocation5 + $0x98] sm:$0xff]  ;;  %v93_v40 = vld [vmem:[#allocation5 + $0x90] sm:$0xff] }
  0x29   :  { %2075 = vmatprep.subr.mxu1 %v117_v17  ;;  %1676 = vmatprep.subr.mxu0 %v100_v18  ;;  %v78_v37 = vld [vmem:[#allocation5 + $0x18] sm:$0xff]  ;;  %v41_v39 = vld [vmem:[#allocation2] sm:$0xff]  ;;  %v77_v41 = vld [vmem:[#allocation5 + $0x10] sm:$0xff] }
  0x2a   :  { %2076 = vmatpush3.msra.mxu1 %v117_v17  ;;  %1677 = vmatpush3.msra.mxu0 %v84_v19  ;;  %v110_v38 = vld [vmem:[#allocation5 + $0x118] sm:$0xff]  ;;  %v109_v42 = vld [vmem:[#allocation5 + $0x110] sm:$0xff]  ;;  %v42_v43 = vld [vmem:[#allocation2 + $0x8] sm:$0xff]  ;;  %v63_v45 = vrot.slane %v41_v39, 6  ;;  %v50_v53 = vrot.slane %v41_v39, 4 }
  0x2b   :  { %2077 = vmatprep.subr.mxu1 %v116_v20  ;;  %1678 = vmatprep.subr.mxu0 %v99_v21  ;;  %v92_v44 = vld [vmem:[#allocation5 + $0x88] sm:$0xff]  ;;  %vm2435_vm1 = vmneg %vm62_vm0  ;;  %v91_v48 = vld [vmem:[#allocation5 + $0x80] sm:$0xff]  ;;  %v64_v50 = vrot.slane %v42_v43, 6  ;;  %v51_v56 = vrot.slane %v42_v43, 4 }
  0x2c   :  { %2078 = vmatpush3.msra.mxu1 %v116_v20  ;;  %1679 = vmatpush3.msra.mxu0 %v83_v22  ;;  %v76_v46 = vld [vmem:[#allocation5 + $0x8] sm:$0xff]  ;;  %v43_v51 = vld [vmem:[#allocation2 + $0x10] sm:$0xff]  ;;  %v75_v52 = vld [vmem:[#allocation5] sm:$0xff] }
  0x2d   :  { %2079 = vmatprep.subr.mxu1 %v115_v23  ;;  %1680 = vmatprep.subr.mxu0 %v98_v24  ;;  %v108_v49 = vld [vmem:[#allocation5 + $0x108] sm:$0xff]  ;;  %vm2442_vm3 = vmneg %vm49_vm2  ;;  %v107_v55 = vld [vmem:[#allocation5 + $0x100] sm:$0xff]  ;;  %v66_v57 = vrot.slane %v43_v51, 6  ;;  %v65_v58 = vsel %vm62_vm0, %v63_v45, %v64_v50  ;;  %v52_v61 = vsel %vm49_vm2, %v50_v53, %v51_v56  ;;  %v53_v62 = vrot.slane %v43_v51, 4 }
  0x2e   :  { %2080 = vmatpush3.msra.mxu1 %v115_v23  ;;  %1681 = vmatpush3.msra.mxu0 %v82_v25  ;;  %v44_v59 = vld [vmem:[#allocation2 + $0x18] sm:$0xff]  ;;  %v359_v3 = vld [vmem:[#allocation5 + $0x270] sm:$0xff]  ;;  %v358_v9 = vld [vmem:[#allocation5 + $0x268] sm:$0xff] }
  0x2f   :  { %2081 = vmatprep.subr.mxu1 %v114_v26  ;;  %1682 = vmatprep.subr.mxu0 %v97_v27  ;;  %v360_v60 = vld [vmem:[#allocation5 + $0x278] sm:$0xff]  ;;  %v67_v0 = vsel %vm62_vm0, %v64_v50, %v66_v57  ;;  %v68_v1 = vrot.slane %v44_v59, 6  ;;  %v343_v4 = vld [vmem:[#allocation5 + $0x1f0] sm:$0xff]  ;;  %v54_v5 = vsel %vm49_vm2, %v51_v56, %v53_v62  ;;  %v55_v6 = vrot.slane %v44_v59, 4  ;;  %v342_v10 = vld [vmem:[#allocation5 + $0x1e8] sm:$0xff] }
  0x30   :  { %2082 = vmatpush3.msra.mxu1 %v114_v26  ;;  %1683 = vmatpush3.msra.mxu0 %v81_v28  ;;  %v376_v63 = vld [vmem:[#allocation5 + $0x2f8] sm:$0xff]  ;;  %v375_v7 = vld [vmem:[#allocation5 + $0x2f0] sm:$0xff]  ;;  %v374_v11 = vld [vmem:[#allocation5 + $0x2e8] sm:$0xff] }
  0x31   :  { %2083 = vmatprep.subr.mxu1 %v113_v29  ;;  %1684 = vmatprep.subr.mxu0 %v96_v30  ;;  %v344_v2 = vld [vmem:[#allocation5 + $0x1f8] sm:$0xff]  ;;  %v69_v8 = vsel %vm62_vm0, %v66_v57, %v68_v1  ;;  %v357_v12 = vld [vmem:[#allocation5 + $0x260] sm:$0xff]  ;;  %v56_v13 = vsel %vm49_vm2, %v53_v62, %v55_v6  ;;  %v355_v19 = vld [vmem:[#allocation5 + $0x250] sm:$0xff] }
  0x32   :  { %2084 = vmatpush3.msra.mxu1 %v113_v29  ;;  %1685 = vmatpush3.msra.mxu0 %v80_v31  ;;  %v341_v14 = vld [vmem:[#allocation5 + $0x1e0] sm:$0xff]  ;;  %v356_v16 = vld [vmem:[#allocation5 + $0x258] sm:$0xff]  ;;  %v339_v20 = vld [vmem:[#allocation5 + $0x1d0] sm:$0xff] }
  0x33   :  { %2085 = vmatprep.subr.mxu1 %v112_v32  ;;  %1686 = vmatprep.subr.mxu0 %v95_v33  ;;  %v373_v15 = vld [vmem:[#allocation5 + $0x2e0] sm:$0xff]  ;;  %v340_v17 = vld [vmem:[#allocation5 + $0x1d8] sm:$0xff]  ;;  %v371_v21 = vld [vmem:[#allocation5 + $0x2d0] sm:$0xff] }
  0x34   :  { %2086 = vmatpush3.msra.mxu1 %v112_v32  ;;  %1687 = vmatpush3.msra.mxu0 %v79_v34  ;;  %v372_v18 = vld [vmem:[#allocation5 + $0x2d8] sm:$0xff]  ;;  %v354_v22 = vld [vmem:[#allocation5 + $0x248] sm:$0xff]  ;;  %v353_v25 = vld [vmem:[#allocation5 + $0x240] sm:$0xff] }
  0x35   :  { %2087 = vmatprep.subr.mxu1 %v111_v35  ;;  %1688 = vmatprep.subr.mxu0 %v94_v36  ;;  %v338_v23 = vld [vmem:[#allocation5 + $0x1c8] sm:$0xff]  ;;  %v337_v26 = vld [vmem:[#allocation5 + $0x1c0] sm:$0xff]  ;;  %v352_v28 = vld [vmem:[#allocation5 + $0x238] sm:$0xff] }
  0x36   :  { %2088 = vmatpush3.msra.mxu1 %v111_v35  ;;  %1689 = vmatpush3.msra.mxu0 %v78_v37  ;;  %v370_v24 = vld [vmem:[#allocation5 + $0x2c8] sm:$0xff]  ;;  %v369_v27 = vld [vmem:[#allocation5 + $0x2c0] sm:$0xff]  ;;  %v336_v29 = vld [vmem:[#allocation5 + $0x1b8] sm:$0xff] }
  0x37   :  { %2089 = vmatprep.subr.mxu1 %v110_v38  ;;  %1690 = vmatprep.subr.mxu0 %v93_v40  ;;  %v368_v30 = vld [vmem:[#allocation5 + $0x2b8] sm:$0xff]  ;;  %v351_v31 = vld [vmem:[#allocation5 + $0x230] sm:$0xff]  ;;  %v350_v34 = vld [vmem:[#allocation5 + $0x228] sm:$0xff] }
  0x38   :  { %2090 = vmatpush3.msra.mxu1 %v110_v38  ;;  %1691 = vmatpush3.msra.mxu0 %v77_v41  ;;  %v335_v32 = vld [vmem:[#allocation5 + $0x1b0] sm:$0xff]  ;;  %v334_v35 = vld [vmem:[#allocation5 + $0x1a8] sm:$0xff]  ;;  %v349_v37 = vld [vmem:[#allocation5 + $0x220] sm:$0xff] }
  0x39   :  { %2091 = vmatprep.subr.mxu1 %v109_v42  ;;  %1692 = vmatprep.subr.mxu0 %v92_v44  ;;  %v367_v33 = vld [vmem:[#allocation5 + $0x2b0] sm:$0xff]  ;;  %v366_v36 = vld [vmem:[#allocation5 + $0x2a8] sm:$0xff]  ;;  %v333_v38 = vld [vmem:[#allocation5 + $0x1a0] sm:$0xff] }
  0x3a   :  { %2092 = vmatpush3.msra.mxu1 %v109_v42  ;;  %1693 = vmatpush3.msra.mxu0 %v76_v46  ;;  %v348_v40 = vld [vmem:[#allocation5 + $0x218] sm:$0xff]  ;;  %v331_v44 = vld [vmem:[#allocation5 + $0x190] sm:$0xff]  ;;  %v346_v46 = vld [vmem:[#allocation5 + $0x208] sm:$0xff] }
  0x3b   :  { %1653 = vmatprep.mubr.msk.f32.mxu0 %vm2435_vm1, %v63_v45  ;;  %1694 = vmatprep.subr.mxu0 %v91_v48  ;;  %v332_v41 = vld [vmem:[#allocation5 + $0x198] sm:$0xff]  ;;  %v363_v45 = vld [vmem:[#allocation5 + $0x290] sm:$0xff]  ;;  %v330_v48 = vld [vmem:[#allocation5 + $0x188] sm:$0xff] }
  0x3c   :  { %2093 = vmatprep.subr.mxu1 %v108_v49  ;;  %1695 = vmatpush3.msra.mxu0 %v75_v52  ;;  %v364_v42 = vld [vmem:[#allocation5 + $0x298] sm:$0xff]  ;;  %v345_v50 = vld [vmem:[#allocation5 + $0x200] sm:$0xff] }
  0x3d   :  { %2094 = vmatpush3.msra.mxu1 %v108_v49  ;;  %1655 = vmatmul.mubr.msk.f32.vlgmr.msra.gmra.mxu0 %vm2442_vm3, %v50_v53  ;;  %v362_v49 = vld [vmem:[#allocation5 + $0x288] sm:$0xff]  ;;  %v361_v52 = vld [vmem:[#allocation5 + $0x280] sm:$0xff]  ;;  %v123_v53 = vlaneseq  ;;  %v631_v6 = vld [vmem:[#allocation5 + $0x3f8] sm:$0xff] }
  0x3e   :  { %2095 = vmatprep.subr.mxu1 %v107_v55  ;;  %2097 = vmatprep.mubr.f32.mxu1 %v41_v39  ;;  %v365_v39 = vld [vmem:[#allocation5 + $0x2a0] sm:$0xff] }
  0x3f   :  { %2096 = vmatpush3.msra.mxu1 %v107_v55  ;;  %196 = vmatprep.mubr.f32.mxu0 %v65_v58  ;;  %v2454_v55 = vshrl.u32 %v123_v53, 7  ;;  %v2457_v57 = vld [vmem:[#allocation5 + $0x980] sm:$0xff]  ;;  %v610_v53 = vld [vmem:[#allocation5 + $0x350] sm:$0xff] }
  0x40   :  { %2098 = vmatmul.mubr.f32.vlgmr.msra.gmra.mxu1 %v42_v43  ;;  %1728 = vmatprep.subr.mxu0 %v360_v60  ;;  %v347_v43 = vld [vmem:[#allocation5 + $0x210] sm:$0xff] }
  0x41   :  { %2100 = vmatprep.mubr.f32.mxu1 %v43_v51  ;;  %197 = vmatmul.mubr.f32.gmra.mxu0 %v52_v61  ;;  %v329_v51 = vld [vmem:[#allocation5 + $0x180] sm:$0xff]  ;;  %v125_v56 = vsub.s32 0, %v2454_v55 }
  0x42   :  { %2103 = vmatprep.subr.mxu1 %v376_v63  ;;  %201 = vmatprep.mubr.f32.mxu0 %v67_v0 }
  0x43   :  { %1729 = vmatpush3.msra.mxu0 %v344_v2  ;;  %2104 = vmatpush3.msra.mxu1 %v376_v63 }
  0x44   :  { %2101 = vmatmul.mubr.f32.gmra.mxu1 %v44_v59  ;;  %1730 = vmatprep.subr.mxu0 %v359_v3  ;;  %v126_v59 = vrot.slane %v2457_v57, %v125_v56  ;;  %v642_v56 = vld [vmem:[#allocation5 + $0x450] sm:$0xff] }
  0x45   :  { %1731 = vmatpush3.msra.mxu0 %v343_v4  ;;  %2105 = vmatprep.subr.mxu1 %v375_v7 }
  0x46   :  { %202 = vmatmul.mubr.f32.gmra.mxu0 %v54_v5  ;;  %1732 = vmatprep.subr.mxu0 %v358_v9  ;;  %v647_v9 = vld [vmem:[#allocation5 + $0x478] sm:$0xff] }
  0x47   :  { %206 = vmatprep.mubr.f32.mxu0 %v69_v8  ;;  %2106 = vmatpush3.msra.mxu1 %v375_v7 }
  0x48   :  { %1733 = vmatpush3.msra.mxu0 %v342_v10  ;;  %2107 = vmatprep.subr.mxu1 %v374_v11 }
  0x49   :  { %1734 = vmatprep.subr.mxu0 %v357_v12  ;;  %2108 = vmatpush3.msra.mxu1 %v374_v11 }
  0x4a   :  { %207 = vmatmul.mubr.f32.gmra.mxu0 %v56_v13  ;;  %2109 = vmatprep.subr.mxu1 %v373_v15 }
  0x4b   :  { %1735 = vmatpush3.msra.mxu0 %v341_v14  ;;  %2110 = vmatpush3.msra.mxu1 %v373_v15 }
  0x4c   :  { %1736 = vmatprep.subr.mxu0 %v356_v16  ;;  %2111 = vmatprep.subr.mxu1 %v372_v18 }
  0x4d   :  { %1737 = vmatpush3.msra.mxu0 %v340_v17  ;;  %2112 = vmatpush3.msra.mxu1 %v372_v18  ;;  %v615_v17 = vld [vmem:[#allocation5 + $0x378] sm:$0xff] }
  0x4e   :  { %1738 = vmatprep.subr.mxu0 %v355_v19  ;;  %2113 = vmatprep.subr.mxu1 %v371_v21 }
  0x4f   :  { %1739 = vmatpush3.msra.mxu0 %v339_v20  ;;  %2114 = vmatpush3.msra.mxu1 %v371_v21  ;;  %v630_v20 = vld [vmem:[#allocation5 + $0x3f0] sm:$0xff] }
  0x50   :  { %1740 = vmatprep.subr.mxu0 %v354_v22  ;;  %2115 = vmatprep.subr.mxu1 %v370_v24 }
  0x51   :  { %1741 = vmatpush3.msra.mxu0 %v338_v23  ;;  %2116 = vmatpush3.msra.mxu1 %v370_v24  ;;  %v614_v23 = vld [vmem:[#allocation5 + $0x370] sm:$0xff] }
  0x52   :  { %1742 = vmatprep.subr.mxu0 %v353_v25  ;;  %2117 = vmatprep.subr.mxu1 %v369_v27 }
  0x53   :  { %1743 = vmatpush3.msra.mxu0 %v337_v26  ;;  %2118 = vmatpush3.msra.mxu1 %v369_v27 }
  0x54   :  { %1744 = vmatprep.subr.mxu0 %v352_v28  ;;  %2119 = vmatprep.subr.mxu1 %v368_v30  ;;  %v629_v28 = vld [vmem:[#allocation5 + $0x3e8] sm:$0xff] }
  0x55   :  { %1745 = vmatpush3.msra.mxu0 %v336_v29  ;;  %2120 = vmatpush3.msra.mxu1 %v368_v30 }
  0x56   :  { %1746 = vmatprep.subr.mxu0 %v351_v31  ;;  %2121 = vmatprep.subr.mxu1 %v367_v33 }
  0x57   :  { %1747 = vmatpush3.msra.mxu0 %v335_v32  ;;  %2122 = vmatpush3.msra.mxu1 %v367_v33  ;;  %v646_v32 = vld [vmem:[#allocation5 + $0x470] sm:$0xff]  ;;  %v613_v33 = vld [vmem:[#allocation5 + $0x368] sm:$0xff] }
  0x58   :  { %1748 = vmatprep.subr.mxu0 %v350_v34  ;;  %2123 = vmatprep.subr.mxu1 %v366_v36 }
  0x59   :  { %1749 = vmatpush3.msra.mxu0 %v334_v35  ;;  %2124 = vmatpush3.msra.mxu1 %v366_v36 }
  0x5a   :  { %1750 = vmatprep.subr.mxu0 %v349_v37  ;;  %2125 = vmatprep.subr.mxu1 %v365_v39  ;;  %v628_v37 = vld [vmem:[#allocation5 + $0x3e0] sm:$0xff] }
  0x5b   :  { %1751 = vmatpush3.msra.mxu0 %v333_v38  ;;  %2126 = vmatpush3.msra.mxu1 %v365_v39 }
  0x5c   :  { %1752 = vmatprep.subr.mxu0 %v348_v40  ;;  %2127 = vmatprep.subr.mxu1 %v364_v42 }
  0x5d   :  { %1753 = vmatpush3.msra.mxu0 %v332_v41  ;;  %2128 = vmatpush3.msra.mxu1 %v364_v42  ;;  %v645_v41 = vld [vmem:[#allocation5 + $0x468] sm:$0xff]  ;;  %v612_v42 = vld [vmem:[#allocation5 + $0x360] sm:$0xff] }
  0x5e   :  { %1754 = vmatprep.subr.mxu0 %v347_v43  ;;  %2129 = vmatprep.subr.mxu1 %v363_v45  ;;  %v627_v43 = vld [vmem:[#allocation5 + $0x3d8] sm:$0xff] }
  0x5f   :  { %1755 = vmatpush3.msra.mxu0 %v331_v44  ;;  %2130 = vmatpush3.msra.mxu1 %v363_v45 }
  0x60   :  { %1756 = vmatprep.subr.mxu0 %v346_v46  ;;  %2131 = vmatprep.subr.mxu1 %v362_v49  ;;  %v644_v46 = vld [vmem:[#allocation5 + $0x460] sm:$0xff] }
  0x61   :  { %1757 = vmatpush3.msra.mxu0 %v330_v48  ;;  %2132 = vmatpush3.msra.mxu1 %v362_v49 }
  0x62   :  { %1758 = vmatprep.subr.mxu0 %v345_v50  ;;  %2133 = vmatprep.subr.mxu1 %v361_v52  ;;  %v611_v50 = vld [vmem:[#allocation5 + $0x358] sm:$0xff] }
  0x63   :  { %1759 = vmatpush3.msra.mxu0 %v329_v51  ;;  %2134 = vmatpush3.msra.mxu1 %v361_v52  ;;  %v643_v51 = vld [vmem:[#allocation5 + $0x458] sm:$0xff]  ;;  %v626_v52 = vld [vmem:[#allocation5 + $0x3d0] sm:$0xff] }
  0x64   :  { %1792 = vmatprep.subr.mxu0 %v631_v6  ;;  %2141 = vmatprep.subr.mxu1 %v647_v9  ;;  %v638_v6 = vld [vmem:[#allocation5 + $0x430] sm:$0xff] }
  0xfd   :  { %v1696_v58 = vpop.f32.mrf.mxu0 }
  0xff   :  { %v1697_v60 = vpop.f32.mrf.mxu0 }
 0x100   :  { %v2099_v61 = vpop.f32.mrf.mxu1  ;;  %v1698_v62 = vadd.f32 %v1697_v60, %v1696_v58  ;;  %v625_v58 = vld [vmem:[#allocation5 + $0x3c8] sm:$0xff]  ;;  %v624_v60 = vld [vmem:[#allocation5 + $0x3c0] sm:$0xff] }
 0x101   :  { %v1699_v63 = vpop.f32.mrf.mxu0 }
 0x102   :  { %v278_v0 = vpop.f32.mrf.mxu1  ;;  %v194_v1 = vadd.f32 %v1698_v62, %v126_v59  ;;  %v608_v62 = vld [vmem:[#allocation5 + $0x340] sm:$0xff] }
 0x103   :  { %v1700_v2 = vpop.f32.mrf.mxu0 }
 0x104   :  { %v279_v3 = vadd.f32 %v278_v0, %v194_v1  ;;  %v1701_v4 = vadd.f32 %v1700_v2, %v1699_v63  ;;  %v2102_v11 = vpop.f32.mrf.mxu1  ;;  %v623_v63 = vld [vmem:[#allocation5 + $0x3b8] sm:$0xff]  ;;  %v640_v0 = vld [vmem:[#allocation5 + $0x440] sm:$0xff]  ;;  %v622_v2 = vld [vmem:[#allocation5 + $0x3b0] sm:$0xff] }
 0x105   :  { %v607_v1 = vld [vmem:[#allocation5 + $0x338] sm:$0xff] }
 0x106   :  { %v1702_v5 = vpop.f32.mrf.mxu0  ;;  %v297_v7 = vmax.f32 %v279_v3, 0.0  ;;  %v199_v8 = vadd.f32 %v1701_v4, %v126_v59  ;;  %559 = vrot.lane.b32.xlu0 %v279_v3, %s2408_s0  ;;  %v288_v21 = vpop.f32.mrf.mxu1  ;;  %v639_v3 = vld [vmem:[#allocation5 + $0x438] sm:$0xff]  ;;  %v606_v4 = vld [vmem:[#allocation5 + $0x330] sm:$0xff] }
 0x108   :  { %v1703_v10 = vpop.f32.mrf.mxu0  ;;  %v305_v12 = vrot.slane %v297_v7, 4  ;;  %v317_v13 = vrot.slane %v297_v7, 6  ;;  %2135 = vmatprep.mubr.f32.mxu1 %v297_v7  ;;  %v284_v15 = vadd.f32 %v2099_v61, %v199_v8  ;;  %v641_v61 = vld [vmem:[#allocation5 + $0x448] sm:$0xff]  ;;  %v620_v8 = vld [vmem:[#allocation5 + $0x3a0] sm:$0xff] }
 0x109   :  { %v1704_v14 = vadd.f32 %v1703_v10, %v1702_v5  ;;  %v621_v5 = vld [vmem:[#allocation5 + $0x3a8] sm:$0xff]  ;;  %v604_v10 = vld [vmem:[#allocation5 + $0x320] sm:$0xff] }
 0x10a   :  { %v1705_v16 = vpop.f32.mrf.mxu0  ;;  %v298_v19 = vmax.f32 %v284_v15, 0.0  ;;  %561 = vrot.lane.b32.xlu0 %v284_v15, %s2408_s0  ;;  %1657 = vmatprep.mubr.msk.f32.mxu0 %vm2435_vm1, %v317_v13  ;;  %v605_v7 = vld [vmem:[#allocation5 + $0x328] sm:$0xff]  ;;  %v635_v15 = vld [vmem:[#allocation5 + $0x418] sm:$0xff] }
 0x10b   :  { %v204_v18 = vadd.f32 %v1704_v14, %v126_v59  ;;  %1659 = vmatmul.mubr.msk.f32.vlgmr.msra.gmra.mxu0 %vm2442_vm3, %v305_v12  ;;  %v618_v14 = vld [vmem:[#allocation5 + $0x390] sm:$0xff] }
 0x10c   :  { %v1706_v22 = vpop.f32.mrf.mxu0  ;;  %2136 = vmatmul.mubr.f32.vlgmr.msra.gmra.mxu1 %v298_v19  ;;  %v318_v26 = vrot.slane %v298_v19, 6  ;;  %v306_v27 = vrot.slane %v298_v19, 4  ;;  %1793 = vmatpush3.msra.mxu0 %v615_v17  ;;  %v617_v17 = vld [vmem:[#allocation5 + $0x388] sm:$0xff] }
 0x10d   :  { %v289_v24 = vadd.f32 %v288_v21, %v204_v18  ;;  %v1707_v25 = vadd.f32 %v1706_v22, %v1705_v16  ;;  %1794 = vmatprep.subr.mxu0 %v630_v20  ;;  %2142 = vmatpush3.msra.mxu1 %v647_v9  ;;  %v637_v9 = vld [vmem:[#allocation5 + $0x428] sm:$0xff]  ;;  %v602_v16 = vld [vmem:[#allocation5 + $0x310] sm:$0xff]  ;;  %v616_v20 = vld [vmem:[#allocation5 + $0x380] sm:$0xff] }
 0x10e   :  { %v319_v47 = vsel %vm62_vm0, %v317_v13, %v318_v26  ;;  %v307_v31 = vsel %vm49_vm2, %v305_v12, %v306_v27  ;;  %1795 = vmatpush3.msra.mxu0 %v614_v23  ;;  %2143 = vmatprep.subr.mxu1 %v646_v32  ;;  %v636_v12 = vld [vmem:[#allocation5 + $0x420] sm:$0xff]  ;;  %v603_v13 = vld [vmem:[#allocation5 + $0x318] sm:$0xff]  ;;  %v634_v18 = vld [vmem:[#allocation5 + $0x410] sm:$0xff] }
 0x10f   :  { %v299_v29 = vmax.f32 %v289_v24, 0.0  ;;  %v209_v30 = vadd.f32 %v1707_v25, %v126_v59  ;;  %563 = vrot.lane.b32.xlu1 %v289_v24, %s2408_s0  ;;  %450 = vmatprep.mubr.f32.mxu0 %v319_v47  ;;  %v609_v59 = vld [vmem:[#allocation5 + $0x348] sm:$0xff]  ;;  %v600_v22 = vld [vmem:[#allocation5 + $0x300] sm:$0xff]  ;;  %v873_v24 = vld [vmem:[#allocation5 + $0x578] sm:$0xff] }
 0x110   :  { %1796 = vmatprep.subr.mxu0 %v629_v28  ;;  %451 = vmatmul.mubr.f32.gmra.mxu0 %v307_v31  ;;  %v601_v19 = vld [vmem:[#allocation5 + $0x308] sm:$0xff]  ;;  %v632_v23 = vld [vmem:[#allocation5 + $0x400] sm:$0xff]  ;;  %v889_v25 = vld [vmem:[#allocation5 + $0x5f8] sm:$0xff] }
 0x111   :  { %2138 = vmatprep.mubr.f32.mxu1 %v299_v29  ;;  %v294_v34 = vadd.f32 %v2102_v11, %v209_v30  ;;  %v320_v35 = vrot.slane %v299_v29, 6  ;;  %v308_v36 = vrot.slane %v299_v29, 4  ;;  %1797 = vmatpush3.msra.mxu0 %v613_v33  ;;  %v619_v11 = vld [vmem:[#allocation5 + $0x398] sm:$0xff]  ;;  %v633_v21 = vld [vmem:[#allocation5 + $0x408] sm:$0xff] }
 0x112   :  { %2144 = vmatpush3.msra.mxu1 %v646_v32  ;;  %1798 = vmatprep.subr.mxu0 %v628_v37 }
 0x113   :  { %565 = vrot.lane.b32.xlu1 %v294_v34, %s2408_s0  ;;  %v321_v38 = vsel %vm62_vm0, %v318_v26, %v320_v35  ;;  %v309_v39 = vsel %vm49_vm2, %v306_v27, %v308_v36  ;;  %v300_v40 = vmax.f32 %v294_v34, 0.0  ;;  %2145 = vmatprep.subr.mxu1 %v645_v41  ;;  %v379_v26 = vsub.s32 1, %v2454_v55 }
 0x114   :  { %455 = vmatprep.mubr.f32.mxu0 %v321_v38  ;;  %1799 = vmatpush3.msra.mxu0 %v612_v42 }
 0x115   :  { %456 = vmatmul.mubr.f32.gmra.mxu0 %v309_v39  ;;  %2139 = vmatmul.mubr.f32.gmra.mxu1 %v300_v40  ;;  %v322_v44 = vrot.slane %v300_v40, 6  ;;  %v310_v45 = vrot.slane %v300_v40, 4  ;;  %v380_v28 = vrot.slane %v2457_v57, %v379_v26 }
 0x116   :  { %2146 = vmatpush3.msra.mxu1 %v645_v41  ;;  %1800 = vmatprep.subr.mxu0 %v627_v43 }
 0x117   :  { %v323_v48 = vsel %vm62_vm0, %v320_v35, %v322_v44  ;;  %v311_v49 = vsel %vm49_vm2, %v308_v36, %v310_v45  ;;  %2147 = vmatprep.subr.mxu1 %v644_v46  ;;  %1801 = vmatpush3.msra.mxu0 %v611_v50 }
 0x118   :  { %460 = vmatprep.mubr.f32.mxu0 %v323_v48  ;;  %2148 = vmatpush3.msra.mxu1 %v644_v46 }
 0x119   :  { %461 = vmatmul.mubr.f32.gmra.mxu0 %v311_v49  ;;  %2149 = vmatprep.subr.mxu1 %v643_v51 }
 0x11a   :  { %1802 = vmatprep.subr.mxu0 %v626_v52  ;;  %2150 = vmatpush3.msra.mxu1 %v643_v51 }
 0x11b   :  { %1803 = vmatpush3.msra.mxu0 %v610_v53  ;;  %2151 = vmatprep.subr.mxu1 %v642_v56 }
 0x11c   :  { %1804 = vmatprep.subr.mxu0 %v625_v58  ;;  %2152 = vmatpush3.msra.mxu1 %v642_v56 }
 0x11d   :  { %1805 = vmatpush3.msra.mxu0 %v609_v59  ;;  %2153 = vmatprep.subr.mxu1 %v641_v61 }
 0x11e   :  { %1806 = vmatprep.subr.mxu0 %v624_v60  ;;  %2154 = vmatpush3.msra.mxu1 %v641_v61 }
 0x11f   :  { %1807 = vmatpush3.msra.mxu0 %v608_v62  ;;  %2155 = vmatprep.subr.mxu1 %v640_v0 }
 0x120   :  { %1808 = vmatprep.subr.mxu0 %v623_v63  ;;  %2156 = vmatpush3.msra.mxu1 %v640_v0  ;;  %v857_v0 = vld [vmem:[#allocation5 + $0x4f8] sm:$0xff] }
 0x121   :  { %1809 = vmatpush3.msra.mxu0 %v607_v1  ;;  %2157 = vmatprep.subr.mxu1 %v639_v3  ;;  %v872_v1 = vld [vmem:[#allocation5 + $0x570] sm:$0xff] }
 0x122   :  { %1810 = vmatprep.subr.mxu0 %v622_v2  ;;  %2158 = vmatpush3.msra.mxu1 %v639_v3 }
 0x123   :  { %1811 = vmatpush3.msra.mxu0 %v606_v4  ;;  %2159 = vmatprep.subr.mxu1 %v638_v6 }
 0x124   :  { %1812 = vmatprep.subr.mxu0 %v621_v5  ;;  %2160 = vmatpush3.msra.mxu1 %v638_v6  ;;  %v2409_v5 = vmov 0.0   ;;  %v856_v6 = vld [vmem:[#allocation5 + $0x4f0] sm:$0xff] }
 0x125   :  { %1813 = vmatpush3.msra.mxu0 %v605_v7  ;;  %2161 = vmatprep.subr.mxu1 %v637_v9 }
 0x126   :  { %1814 = vmatprep.subr.mxu0 %v620_v8  ;;  %2162 = vmatpush3.msra.mxu1 %v637_v9  ;;  %v871_v8 = vld [vmem:[#allocation5 + $0x568] sm:$0xff]  ;;  %v888_v9 = vld [vmem:[#allocation5 + $0x5f0] sm:$0xff] }
 0x127   :  { %1815 = vmatpush3.msra.mxu0 %v604_v10  ;;  %2163 = vmatprep.subr.mxu1 %v636_v12 }
 0x128   :  { %1816 = vmatprep.subr.mxu0 %v619_v11  ;;  %2164 = vmatpush3.msra.mxu1 %v636_v12 }
 0x129   :  { %1817 = vmatpush3.msra.mxu0 %v603_v13  ;;  %2165 = vmatprep.subr.mxu1 %v635_v15 }
 0x12a   :  { %1818 = vmatprep.subr.mxu0 %v618_v14  ;;  %2166 = vmatpush3.msra.mxu1 %v635_v15  ;;  %v855_v14 = vld [vmem:[#allocation5 + $0x4e8] sm:$0xff] }
 0x12b   :  { %1819 = vmatpush3.msra.mxu0 %v602_v16  ;;  %2167 = vmatprep.subr.mxu1 %v634_v18 }
 0x12c   :  { %1820 = vmatprep.subr.mxu0 %v617_v17  ;;  %2168 = vmatpush3.msra.mxu1 %v634_v18  ;;  %v870_v18 = vld [vmem:[#allocation5 + $0x560] sm:$0xff] }
 0x12d   :  { %1821 = vmatpush3.msra.mxu0 %v601_v19  ;;  %2169 = vmatprep.subr.mxu1 %v633_v21 }
 0x12e   :  { %1822 = vmatprep.subr.mxu0 %v616_v20  ;;  %2170 = vmatpush3.msra.mxu1 %v633_v21  ;;  %v854_v20 = vld [vmem:[#allocation5 + $0x4e0] sm:$0xff]  ;;  %v887_v21 = vld [vmem:[#allocation5 + $0x5e8] sm:$0xff] }
 0x12f   :  { %1823 = vmatpush3.msra.mxu0 %v600_v22  ;;  %2171 = vmatprep.subr.mxu1 %v632_v23 }
 0x130   :  { %2172 = vmatpush3.msra.mxu1 %v632_v23  ;;  %1856 = vmatprep.subr.mxu0 %v873_v24  ;;  %v869_v24 = vld [vmem:[#allocation5 + $0x558] sm:$0xff] }
 0x131   :  { %2179 = vmatprep.subr.mxu1 %v889_v25 }
 0x178   :  { %v560_v33 = vpop.permute.xlu0 %559 }
 0x179   :  { %v572_v40 = vsel %vm571_vm4, %v560_v33, 0.0  ;;  %v867_v33 = vld [vmem:[#allocation5 + $0x548] sm:$0xff] }
 0x17c   :  { %v562_v45 = vpop.permute.xlu0 %561 }
 0x17d   :  { %v573_v56 = vsel %vm571_vm4, %v562_v45, 0.0  ;;  %v863_v45 = vld [vmem:[#allocation5 + $0x528] sm:$0xff] }
 0x181   :  { %v564_v51 = vpop.permute.xlu1 %563 }
 0x182   :  { %v574_v7 = vsel %vm571_vm4, %v564_v51, 0.0  ;;  %v879_v51 = vld [vmem:[#allocation5 + $0x5a8] sm:$0xff] }
 0x185   :  { %v566_v10 = vpop.permute.xlu1 %565 }
 0x186   :  { %v575_v19 = vsel %vm571_vm4, %v566_v10, 0.0 }
 0x1cb   :  { %v1760_v27 = vpop.f32.mrf.mxu0 }
 0x1cc   :  { %v2137_v29 = vpop.f32.mrf.mxu1 }
 0x1cd   :  { %v1761_v30 = vpop.f32.mrf.mxu0 }
 0x1ce   :  { %v1762_v47 = vadd.f32 %v1761_v30, %v1760_v27  ;;  %v532_v34 = vpop.f32.mrf.mxu1  ;;  %v853_v27 = vld [vmem:[#allocation5 + $0x4d8] sm:$0xff] }
 0x1d0   :  { %v448_v31 = vadd.f32 %v1762_v47, %v380_v28  ;;  %v1763_v32 = vpop.f32.mrf.mxu0  ;;  %v885_v47 = vld [vmem:[#allocation5 + $0x5d8] sm:$0xff] }
 0x1d2   :  { %v533_v35 = vadd.f32 %v532_v34, %v448_v31  ;;  %v1764_v36 = vpop.f32.mrf.mxu0  ;;  %v884_v34 = vld [vmem:[#allocation5 + $0x5d0] sm:$0xff] }
 0x1d3   :  { %v1765_v37 = vadd.f32 %v1764_v36, %v1763_v32  ;;  %v852_v32 = vld [vmem:[#allocation5 + $0x4d0] sm:$0xff]  ;;  %v866_v36 = vld [vmem:[#allocation5 + $0x540] sm:$0xff] }
 0x1d4   :  { %v551_v38 = vmax.f32 %v533_v35, 0.0  ;;  %v851_v35 = vld [vmem:[#allocation5 + $0x4c8] sm:$0xff] }
 0x1d5   :  { %v1766_v39 = vpop.f32.mrf.mxu0  ;;  %v453_v41 = vadd.f32 %v1765_v37, %v380_v28  ;;  %v2140_v43 = vpop.f32.mrf.mxu1  ;;  %v883_v37 = vld [vmem:[#allocation5 + $0x5c8] sm:$0xff] }
 0x1d6   :  { %v576_v42 = vadd.f32 %v572_v40, %v551_v38  ;;  %v850_v38 = vld [vmem:[#allocation5 + $0x4c0] sm:$0xff] }
 0x1d7   :  { %v1767_v44 = vpop.f32.mrf.mxu0  ;;  %v538_v46 = vadd.f32 %v2137_v29, %v453_v41  ;;  %v542_v58 = vpop.f32.mrf.mxu1  ;;  %v868_v29 = vld [vmem:[#allocation5 + $0x550] sm:$0xff]  ;;  %v882_v40 = vld [vmem:[#allocation5 + $0x5c0] sm:$0xff]  ;;  %v849_v41 = vld [vmem:[#allocation5 + $0x4b8] sm:$0xff] }
 0x1d8   :  { %v1768_v48 = vadd.f32 %v1767_v44, %v1766_v39  ;;  %v580_v49 = vmax.f32 %v576_v42, 0.0  ;;  %v865_v39 = vld [vmem:[#allocation5 + $0x538] sm:$0xff]  ;;  %v864_v42 = vld [vmem:[#allocation5 + $0x530] sm:$0xff] }
 0x1d9   :  { %v1769_v50 = vpop.f32.mrf.mxu0  ;;  %v552_v52 = vmax.f32 %v538_v46, 0.0  ;;  %v881_v44 = vld [vmem:[#allocation5 + $0x5b8] sm:$0xff]  ;;  %v847_v46 = vld [vmem:[#allocation5 + $0x4a8] sm:$0xff] }
 0x1da   :  { %v458_v53 = vadd.f32 %v1768_v48, %v380_v28  ;;  %2173 = vmatprep.mubr.f32.mxu1 %v580_v49  ;;  %v588_v60 = vrot.slane %v580_v49, 4  ;;  %v880_v48 = vld [vmem:[#allocation5 + $0x5b0] sm:$0xff] }
 0x1db   :  { %v1770_v59 = vpop.f32.mrf.mxu0  ;;  %v577_v61 = vadd.f32 %v573_v56, %v552_v52  ;;  %v861_v52 = vld [vmem:[#allocation5 + $0x518] sm:$0xff]  ;;  %v878_v56 = vld [vmem:[#allocation5 + $0x5a0] sm:$0xff] }
 0x1dc   :  { %v543_v62 = vadd.f32 %v542_v58, %v458_v53  ;;  %v1771_v63 = vadd.f32 %v1770_v59, %v1769_v50  ;;  %1661 = vmatprep.mubr.msk.f32.mxu0 %vm2442_vm3, %v588_v60  ;;  %v846_v50 = vld [vmem:[#allocation5 + $0x4a0] sm:$0xff]  ;;  %v845_v53 = vld [vmem:[#allocation5 + $0x498] sm:$0xff]  ;;  %v860_v58 = vld [vmem:[#allocation5 + $0x510] sm:$0xff] }
 0x1dd   :  { %v581_v2 = vmax.f32 %v577_v61, 0.0  ;;  %717 = vmatmul.mubr.f32.vlgmr.msra.gmra.mxu0 %v2409_v5  ;;  %v844_v59 = vld [vmem:[#allocation5 + $0x490] sm:$0xff]  ;;  %v859_v61 = vld [vmem:[#allocation5 + $0x508] sm:$0xff] }
 0x1de   :  { %v553_v3 = vmax.f32 %v543_v62, 0.0  ;;  %v463_v4 = vadd.f32 %v1771_v63, %v380_v28  ;;  %1857 = vmatpush3.msra.mxu0 %v857_v0  ;;  %v886_v28 = vld [vmem:[#allocation5 + $0x5e0] sm:$0xff]  ;;  %v843_v62 = vld [vmem:[#allocation5 + $0x488] sm:$0xff]  ;;  %v876_v63 = vld [vmem:[#allocation5 + $0x590] sm:$0xff] }
 0x1df   :  { %2174 = vmatmul.mubr.f32.vlgmr.msra.gmra.mxu1 %v581_v2  ;;  %v589_v13 = vrot.slane %v581_v2, 4  ;;  %1858 = vmatprep.subr.mxu0 %v872_v1  ;;  %v858_v0 = vld [vmem:[#allocation5 + $0x500] sm:$0xff] }
 0x1e0   :  { %v578_v11 = vadd.f32 %v574_v7, %v553_v3  ;;  %v548_v12 = vadd.f32 %v2140_v43, %v463_v4  ;;  %1859 = vmatpush3.msra.mxu0 %v856_v6  ;;  %2180 = vmatpush3.msra.mxu1 %v889_v25  ;;  %v848_v43 = vld [vmem:[#allocation5 + $0x4b0] sm:$0xff]  ;;  %v842_v1 = vld [vmem:[#allocation5 + $0x480] sm:$0xff]  ;;  %v650_v4 = vsub.s32 2, %v2454_v55 }
 0x1e1   :  { %v590_v17 = vsel %vm49_vm2, %v588_v60, %v589_v13  ;;  %1860 = vmatprep.subr.mxu0 %v871_v8  ;;  %2181 = vmatprep.subr.mxu1 %v888_v9  ;;  %v877_v60 = vld [vmem:[#allocation5 + $0x598] sm:$0xff]  ;;  %v874_v3 = vld [vmem:[#allocation5 + $0x580] sm:$0xff] }
 0x1e2   :  { %v582_v15 = vmax.f32 %v578_v11, 0.0  ;;  %v554_v16 = vmax.f32 %v548_v12, 0.0  ;;  %721 = vmatprep.mubr.f32.mxu0 %v590_v17  ;;  %1861 = vmatpush3.msra.mxu0 %v855_v14  ;;  %v651_v7 = vrot.slane %v2457_v57, %v650_v4  ;;  %v1118_v4 = vld [vmem:[#allocation5 + $0x6a8] sm:$0xff] }
 0x1e3   :  { %722 = vmatmul.mubr.f32.gmra.mxu0 %v580_v49  ;;  %1862 = vmatprep.subr.mxu0 %v870_v18  ;;  %v862_v49 = vld [vmem:[#allocation5 + $0x520] sm:$0xff] }
 0x1e4   :  { %2176 = vmatprep.mubr.f32.mxu1 %v582_v15  ;;  %v591_v22 = vrot.slane %v582_v15, 4  ;;  %v579_v23 = vadd.f32 %v575_v19, %v554_v16  ;;  %2182 = vmatpush3.msra.mxu1 %v888_v9  ;;  %v1128_v19 = vld [vmem:[#allocation5 + $0x6f8] sm:$0xff] }
 0x1e5   :  { %1863 = vmatpush3.msra.mxu0 %v854_v20  ;;  %2183 = vmatprep.subr.mxu1 %v887_v21 }
 0x1e6   :  { %v592_v25 = vsel %vm49_vm2, %v589_v13, %v591_v22  ;;  %v583_v26 = vmax.f32 %v579_v23, 0.0  ;;  %1864 = vmatprep.subr.mxu0 %v869_v24  ;;  %2184 = vmatpush3.msra.mxu1 %v887_v21  ;;  %v1112_v23 = vld [vmem:[#allocation5 + $0x678] sm:$0xff] }
 0x1e7   :  { %726 = vmatprep.mubr.f32.mxu0 %v592_v25  ;;  %1865 = vmatpush3.msra.mxu0 %v853_v27  ;;  %v1144_v27 = vld [vmem:[#allocation5 + $0x778] sm:$0xff] }
 0x1e8   :  { %727 = vmatmul.mubr.f32.gmra.mxu0 %v581_v2  ;;  %v593_v30 = vrot.slane %v583_v26, 4  ;;  %2177 = vmatmul.mubr.f32.gmra.mxu1 %v583_v26  ;;  %v875_v2 = vld [vmem:[#allocation5 + $0x588] sm:$0xff]  ;;  %v1127_v26 = vld [vmem:[#allocation5 + $0x6f0] sm:$0xff] }
 0x1e9   :  { %2185 = vmatprep.subr.mxu1 %v886_v28  ;;  %1866 = vmatprep.subr.mxu0 %v868_v29  ;;  %v1111_v29 = vld [vmem:[#allocation5 + $0x670] sm:$0xff] }
 0x1ea   :  { %v594_v31 = vsel %vm49_vm2, %v591_v22, %v593_v30  ;;  %2186 = vmatpush3.msra.mxu1 %v886_v28  ;;  %1867 = vmatpush3.msra.mxu0 %v852_v32 }
 0x1eb   :  { %731 = vmatprep.mubr.f32.mxu0 %v594_v31  ;;  %2187 = vmatprep.subr.mxu1 %v885_v47  ;;  %v1126_v31 = vld [vmem:[#allocation5 + $0x6e8] sm:$0xff] }
 0x1ec   :  { %732 = vmatmul.mubr.f32.gmra.mxu0 %v582_v15  ;;  %2188 = vmatpush3.msra.mxu1 %v885_v47 }
 0x1ed   :  { %1868 = vmatprep.subr.mxu0 %v867_v33  ;;  %2189 = vmatprep.subr.mxu1 %v884_v34 }
 0x1ee   :  { %1869 = vmatpush3.msra.mxu0 %v851_v35  ;;  %2190 = vmatpush3.msra.mxu1 %v884_v34  ;;  %v1110_v34 = vld [vmem:[#allocation5 + $0x668] sm:$0xff] }
 0x1ef   :  { %1870 = vmatprep.subr.mxu0 %v866_v36  ;;  %2191 = vmatprep.subr.mxu1 %v883_v37 }
 0x1f0   :  { %1871 = vmatpush3.msra.mxu0 %v850_v38  ;;  %2192 = vmatpush3.msra.mxu1 %v883_v37  ;;  %v1125_v37 = vld [vmem:[#allocation5 + $0x6e0] sm:$0xff] }
 0x1f1   :  { %1872 = vmatprep.subr.mxu0 %v865_v39  ;;  %2193 = vmatprep.subr.mxu1 %v882_v40 }
 0x1f2   :  { %1873 = vmatpush3.msra.mxu0 %v849_v41  ;;  %2194 = vmatpush3.msra.mxu1 %v882_v40  ;;  %v1109_v41 = vld [vmem:[#allocation5 + $0x660] sm:$0xff] }
 0x1f3   :  { %1874 = vmatprep.subr.mxu0 %v864_v42  ;;  %2195 = vmatprep.subr.mxu1 %v881_v44  ;;  %v1143_v42 = vld [vmem:[#allocation5 + $0x770] sm:$0xff] }
 0x1f4   :  { %1875 = vmatpush3.msra.mxu0 %v848_v43  ;;  %2196 = vmatpush3.msra.mxu1 %v881_v44  ;;  %v1124_v43 = vld [vmem:[#allocation5 + $0x6d8] sm:$0xff] }
 0x1f5   :  { %1876 = vmatprep.subr.mxu0 %v863_v45  ;;  %2197 = vmatprep.subr.mxu1 %v880_v48 }
 0x1f6   :  { %1877 = vmatpush3.msra.mxu0 %v847_v46  ;;  %2198 = vmatpush3.msra.mxu1 %v880_v48  ;;  %v1108_v46 = vld [vmem:[#allocation5 + $0x658] sm:$0xff] }
 0x1f7   :  { %1878 = vmatprep.subr.mxu0 %v862_v49  ;;  %2199 = vmatprep.subr.mxu1 %v879_v51 }
 0x1f8   :  { %1879 = vmatpush3.msra.mxu0 %v846_v50  ;;  %2200 = vmatpush3.msra.mxu1 %v879_v51  ;;  %v1123_v50 = vld [vmem:[#allocation5 + $0x6d0] sm:$0xff] }
 0x1f9   :  { %1880 = vmatprep.subr.mxu0 %v861_v52  ;;  %2201 = vmatprep.subr.mxu1 %v878_v56  ;;  %v1107_v51 = vld [vmem:[#allocation5 + $0x650] sm:$0xff]  ;;  %v1142_v52 = vld [vmem:[#allocation5 + $0x768] sm:$0xff] }
 0x1fa   :  { %1881 = vmatpush3.msra.mxu0 %v845_v53  ;;  %2202 = vmatpush3.msra.mxu1 %v878_v56  ;;  %v1122_v56 = vld [vmem:[#allocation5 + $0x6c8] sm:$0xff] }
 0x1fb   :  { %1882 = vmatprep.subr.mxu0 %v860_v58  ;;  %2203 = vmatprep.subr.mxu1 %v877_v60 }
 0x1fc   :  { %1883 = vmatpush3.msra.mxu0 %v844_v59  ;;  %2204 = vmatpush3.msra.mxu1 %v877_v60  ;;  %v1106_v59 = vld [vmem:[#allocation5 + $0x648] sm:$0xff]  ;;  %v1141_v60 = vld [vmem:[#allocation5 + $0x760] sm:$0xff] }
 0x1fd   :  { %1884 = vmatprep.subr.mxu0 %v859_v61  ;;  %2205 = vmatprep.subr.mxu1 %v876_v63  ;;  %v1121_v61 = vld [vmem:[#allocation5 + $0x6c0] sm:$0xff] }
 0x1fe   :  { %1885 = vmatpush3.msra.mxu0 %v843_v62  ;;  %2206 = vmatpush3.msra.mxu1 %v876_v63  ;;  %v1105_v62 = vld [vmem:[#allocation5 + $0x640] sm:$0xff]  ;;  %v1140_v63 = vld [vmem:[#allocation5 + $0x758] sm:$0xff] }
 0x1ff   :  { %1886 = vmatprep.subr.mxu0 %v858_v0  ;;  %2207 = vmatprep.subr.mxu1 %v875_v2  ;;  %v1120_v0 = vld [vmem:[#allocation5 + $0x6b8] sm:$0xff] }
 0x200   :  { %1887 = vmatpush3.msra.mxu0 %v842_v1  ;;  %2208 = vmatpush3.msra.mxu1 %v875_v2  ;;  %v1104_v1 = vld [vmem:[#allocation5 + $0x638] sm:$0xff]  ;;  %v1119_v2 = vld [vmem:[#allocation5 + $0x6b0] sm:$0xff] }
 0x201   :  { %2209 = vmatprep.subr.mxu1 %v874_v3  ;;  %1920 = vmatprep.subr.mxu0 %v1128_v19  ;;  %v1098_v19 = vld [vmem:[#allocation5 + $0x608] sm:$0xff] }
 0x202   :  { %2210 = vmatpush3.msra.mxu1 %v874_v3  ;;  %v1103_v3 = vld [vmem:[#allocation5 + $0x630] sm:$0xff] }
 0x203   :  { %2217 = vmatprep.subr.mxu1 %v1144_v27 }
 0x29d   :  { %v1824_v6 = vpop.f32.mrf.mxu0 }
 0x29f   :  { %v1825_v8 = vpop.f32.mrf.mxu0  ;;  %v2175_v9 = vpop.f32.mrf.mxu1 }
 0x2a0   :  { %v1826_v10 = vadd.f32 %v1825_v8, %v1824_v6  ;;  %v1139_v6 = vld [vmem:[#allocation5 + $0x750] sm:$0xff]  ;;  %v1117_v8 = vld [vmem:[#allocation5 + $0x6a0] sm:$0xff] }
 0x2a1   :  { %v803_v12 = vpop.f32.mrf.mxu1 }
 0x2a2   :  { %v719_v11 = vadd.f32 %v1826_v10, %v651_v7  ;;  %v1101_v10 = vld [vmem:[#allocation5 + $0x620] sm:$0xff] }
 0x2a3   :  { %v1827_v13 = vpop.f32.mrf.mxu0 }
 0x2a4   :  { %v804_v14 = vadd.f32 %v803_v12, %v719_v11  ;;  %v1116_v11 = vld [vmem:[#allocation5 + $0x698] sm:$0xff]  ;;  %v1137_v12 = vld [vmem:[#allocation5 + $0x740] sm:$0xff] }
 0x2a5   :  { %v1828_v15 = vpop.f32.mrf.mxu0 }
 0x2a6   :  { %v822_v16 = vmax.f32 %v804_v14, 0.0  ;;  %v1829_v17 = vadd.f32 %v1828_v15, %v1827_v13  ;;  %1072 = vrot.lane.b32.xlu0 %v804_v14, %s2410_s1  ;;  %v1100_v13 = vld [vmem:[#allocation5 + $0x618] sm:$0xff]  ;;  %v1115_v14 = vld [vmem:[#allocation5 + $0x690] sm:$0xff] }
 0x2a7   :  { %v1136_v15 = vld [vmem:[#allocation5 + $0x738] sm:$0xff] }
 0x2a8   :  { %v1830_v18 = vpop.f32.mrf.mxu0  ;;  %v830_v20 = vrot.slane %v822_v16, 4  ;;  %v724_v21 = vadd.f32 %v1829_v17, %v651_v7  ;;  %2211 = vmatprep.mubr.f32.mxu1 %v822_v16  ;;  %v2178_v57 = vpop.f32.mrf.mxu1  ;;  %v1114_v17 = vld [vmem:[#allocation5 + $0x688] sm:$0xff] }
 0x2aa   :  { %v1831_v22 = vpop.f32.mrf.mxu0  ;;  %1663 = vmatprep.mubr.msk.f32.mxu0 %vm2442_vm3, %v830_v20  ;;  %v809_v25 = vadd.f32 %v2175_v9, %v724_v21  ;;  %v813_v32 = vpop.f32.mrf.mxu1  ;;  %v1138_v9 = vld [vmem:[#allocation5 + $0x748] sm:$0xff] }
 0x2ab   :  { %v1832_v24 = vadd.f32 %v1831_v22, %v1830_v18  ;;  %959 = vmatmul.mubr.f32.vlgmr.msra.gmra.mxu0 %v2409_v5  ;;  %v1135_v18 = vld [vmem:[#allocation5 + $0x730] sm:$0xff]  ;;  %v1134_v21 = vld [vmem:[#allocation5 + $0x728] sm:$0xff]  ;;  %v1133_v22 = vld [vmem:[#allocation5 + $0x720] sm:$0xff] }
 0x2ac   :  { %v1833_v28 = vpop.f32.mrf.mxu0  ;;  %1074 = vrot.lane.b32.xlu1 %v809_v25, %s2410_s1  ;;  %v823_v47 = vmax.f32 %v809_v25, 0.0  ;;  %1921 = vmatpush3.msra.mxu0 %v1112_v23  ;;  %v1132_v23 = vld [vmem:[#allocation5 + $0x718] sm:$0xff]  ;;  %v1130_v25 = vld [vmem:[#allocation5 + $0x708] sm:$0xff] }
 0x2ad   :  { %v729_v30 = vadd.f32 %v1832_v24, %v651_v7  ;;  %1922 = vmatprep.subr.mxu0 %v1127_v26  ;;  %v1131_v24 = vld [vmem:[#allocation5 + $0x710] sm:$0xff]  ;;  %v1129_v26 = vld [vmem:[#allocation5 + $0x700] sm:$0xff] }
 0x2ae   :  { %v1834_v33 = vpop.f32.mrf.mxu0  ;;  %2212 = vmatmul.mubr.f32.vlgmr.msra.gmra.mxu1 %v823_v47  ;;  %v831_v36 = vrot.slane %v823_v47, 4  ;;  %1923 = vmatpush3.msra.mxu0 %v1111_v29  ;;  %v1353_v29 = vld [vmem:[#allocation5 + $0x870] sm:$0xff] }
 0x2af   :  { %v814_v54 = vadd.f32 %v813_v32, %v729_v30  ;;  %v1835_v35 = vadd.f32 %v1834_v33, %v1833_v28  ;;  %1924 = vmatprep.subr.mxu0 %v1126_v31  ;;  %2218 = vmatpush3.msra.mxu1 %v1144_v27  ;;  %v1354_v27 = vld [vmem:[#allocation5 + $0x878] sm:$0xff]  ;;  %v1337_v30 = vld [vmem:[#allocation5 + $0x7f0] sm:$0xff]  ;;  %v1336_v32 = vld [vmem:[#allocation5 + $0x7e8] sm:$0xff] }
 0x2b0   :  { %v832_v40 = vsel %vm49_vm2, %v830_v20, %v831_v36  ;;  %1925 = vmatpush3.msra.mxu0 %v1110_v34  ;;  %2219 = vmatprep.subr.mxu1 %v1143_v42  ;;  %v1113_v20 = vld [vmem:[#allocation5 + $0x680] sm:$0xff]  ;;  %v1338_v28 = vld [vmem:[#allocation5 + $0x7f8] sm:$0xff] }
 0x2b1   :  { %v824_v38 = vmax.f32 %v814_v54, 0.0  ;;  %v734_v39 = vadd.f32 %v1835_v35, %v651_v7  ;;  %1076 = vrot.lane.b32.xlu0 %v814_v54, %s2410_s1  ;;  %963 = vmatprep.mubr.f32.mxu0 %v832_v40  ;;  %v1102_v7 = vld [vmem:[#allocation5 + $0x628] sm:$0xff]  ;;  %v2500_v31 = vld [vmem:[#allocation5 + $0x8f8] sm:$0xff]  ;;  %v1351_v33 = vld [vmem:[#allocation5 + $0x860] sm:$0xff] }
 0x2b2   :  { %1926 = vmatprep.subr.mxu0 %v1125_v37  ;;  %964 = vmatmul.mubr.f32.gmra.mxu0 %v822_v16  ;;  %v1099_v16 = vld [vmem:[#allocation5 + $0x610] sm:$0xff]  ;;  %v1335_v34 = vld [vmem:[#allocation5 + $0x7e0] sm:$0xff]  ;;  %v1350_v54 = vld [vmem:[#allocation5 + $0x858] sm:$0xff] }
 0x2b3   :  { %2214 = vmatprep.mubr.f32.mxu1 %v824_v38  ;;  %v819_v44 = vadd.f32 %v2178_v57, %v734_v39  ;;  %v833_v45 = vrot.slane %v824_v38, 4  ;;  %1927 = vmatpush3.msra.mxu0 %v1109_v41  ;;  %v1097_v57 = vld [vmem:[#allocation5 + $0x600] sm:$0xff]  ;;  %v1334_v35 = vld [vmem:[#allocation5 + $0x7d8] sm:$0xff]  ;;  %v1333_v37 = vld [vmem:[#allocation5 + $0x7d0] sm:$0xff] }
 0x2b4   :  { %1928 = vmatprep.subr.mxu0 %v1124_v43  ;;  %2220 = vmatpush3.msra.mxu1 %v1143_v42  ;;  %v1332_v39 = vld [vmem:[#allocation5 + $0x7c8] sm:$0xff]  ;;  %v1347_v40 = vld [vmem:[#allocation5 + $0x840] sm:$0xff]  ;;  %v1346_v42 = vld [vmem:[#allocation5 + $0x838] sm:$0xff] }
 0x2b5   :  { %1078 = vrot.lane.b32.xlu1 %v819_v44, %s2410_s1  ;;  %v834_v48 = vsel %vm49_vm2, %v831_v36, %v833_v45  ;;  %v825_v49 = vmax.f32 %v819_v44, 0.0  ;;  %1929 = vmatpush3.msra.mxu0 %v1108_v46  ;;  %v1349_v36 = vld [vmem:[#allocation5 + $0x850] sm:$0xff]  ;;  %v1331_v41 = vld [vmem:[#allocation5 + $0x7c0] sm:$0xff]  ;;  %v1330_v43 = vld [vmem:[#allocation5 + $0x7b8] sm:$0xff] }
 0x2b6   :  { %968 = vmatprep.mubr.f32.mxu0 %v834_v48  ;;  %1930 = vmatprep.subr.mxu0 %v1123_v50  ;;  %v1345_v44 = vld [vmem:[#allocation5 + $0x830] sm:$0xff]  ;;  %v1344_v46 = vld [vmem:[#allocation5 + $0x828] sm:$0xff]  ;;  %v1327_v50 = vld [vmem:[#allocation5 + $0x7a0] sm:$0xff] }
 0x2b7   :  { %969 = vmatmul.mubr.f32.gmra.mxu0 %v823_v47  ;;  %v835_v53 = vrot.slane %v825_v49, 4  ;;  %2215 = vmatmul.mubr.f32.gmra.mxu1 %v825_v49  ;;  %v1352_v47 = vld [vmem:[#allocation5 + $0x868] sm:$0xff]  ;;  %v1343_v49 = vld [vmem:[#allocation5 + $0x820] sm:$0xff] }
 0x2b8   :  { %1931 = vmatpush3.msra.mxu0 %v1107_v51  ;;  %2221 = vmatprep.subr.mxu1 %v1142_v52  ;;  %v1328_v48 = vld [vmem:[#allocation5 + $0x7a8] sm:$0xff]  ;;  %v892_v51 = vsub.s32 3, %v2454_v55 }
 0x2b9   :  { %v836_v58 = vsel %vm49_vm2, %v833_v45, %v835_v53  ;;  %1932 = vmatprep.subr.mxu0 %v1122_v56  ;;  %2222 = vmatpush3.msra.mxu1 %v1142_v52  ;;  %v1329_v45 = vld [vmem:[#allocation5 + $0x7b0] sm:$0xff]  ;;  %v2504_v53 = vld [vmem:[#allocation5 + $0x980] sm:$0xff] }
 0x2ba   :  { %973 = vmatprep.mubr.f32.mxu0 %v836_v58  ;;  %1933 = vmatpush3.msra.mxu0 %v1106_v59  ;;  %v893_v56 = vrot.slane %v2504_v53, %v892_v51  ;;  %v1359_v51 = vld [vmem:[#allocation5 + $0x8a0] sm:$0xff] }
 0x2bb   :  { %974 = vmatmul.mubr.f32.gmra.mxu0 %v824_v38  ;;  %2223 = vmatprep.subr.mxu1 %v1141_v60  ;;  %v1348_v38 = vld [vmem:[#allocation5 + $0x848] sm:$0xff] }
 0x2bc   :  { %1934 = vmatprep.subr.mxu0 %v1121_v61  ;;  %2224 = vmatpush3.msra.mxu1 %v1141_v60 }
 0x2bd   :  { %1935 = vmatpush3.msra.mxu0 %v1105_v62  ;;  %2225 = vmatprep.subr.mxu1 %v1140_v63 }
 0x2be   :  { %1936 = vmatprep.subr.mxu0 %v1120_v0  ;;  %2226 = vmatpush3.msra.mxu1 %v1140_v63 }
 0x2bf   :  { %1937 = vmatpush3.msra.mxu0 %v1104_v1  ;;  %1213 = vmatprep.mubr.f32.mxu0 %v2409_v5 }
 0x2c0   :  { %1938 = vmatprep.subr.mxu0 %v1119_v2  ;;  %2227 = vmatprep.subr.mxu1 %v1139_v6 }
 0x2c1   :  { %1939 = vmatpush3.msra.mxu0 %v1103_v3  ;;  %2228 = vmatpush3.msra.mxu1 %v1139_v6 }
 0x2c2   :  { %1940 = vmatprep.subr.mxu0 %v1118_v4  ;;  %2229 = vmatprep.subr.mxu1 %v1138_v9 }
 0x2c3   :  { %1941 = vmatpush3.msra.mxu0 %v1102_v7  ;;  %2230 = vmatpush3.msra.mxu1 %v1138_v9 }
 0x2c4   :  { %1942 = vmatprep.subr.mxu0 %v1117_v8  ;;  %2231 = vmatprep.subr.mxu1 %v1137_v12 }
 0x2c5   :  { %1943 = vmatpush3.msra.mxu0 %v1101_v10  ;;  %2232 = vmatpush3.msra.mxu1 %v1137_v12 }
 0x2c6   :  { %1944 = vmatprep.subr.mxu0 %v1116_v11  ;;  %2233 = vmatprep.subr.mxu1 %v1136_v15 }
 0x2c7   :  { %1945 = vmatpush3.msra.mxu0 %v1100_v13  ;;  %2234 = vmatpush3.msra.mxu1 %v1136_v15 }
 0x2c8   :  { %1946 = vmatprep.subr.mxu0 %v1115_v14  ;;  %2235 = vmatprep.subr.mxu1 %v1135_v18 }
 0x2c9   :  { %1947 = vmatpush3.msra.mxu0 %v1099_v16  ;;  %2236 = vmatpush3.msra.mxu1 %v1135_v18 }
 0x2ca   :  { %1948 = vmatprep.subr.mxu0 %v1114_v17  ;;  %2237 = vmatprep.subr.mxu1 %v1134_v21 }
 0x2cb   :  { %1949 = vmatpush3.msra.mxu0 %v1098_v19  ;;  %2238 = vmatpush3.msra.mxu1 %v1134_v21 }
 0x2cc   :  { %1950 = vmatprep.subr.mxu0 %v1113_v20  ;;  %2239 = vmatprep.subr.mxu1 %v1133_v22 }
 0x2cd   :  { %1951 = vmatpush3.msra.mxu0 %v1097_v57  ;;  %2240 = vmatpush3.msra.mxu1 %v1133_v22 }
 0x2ce   :  { %1214 = vmatmul.mubr.f32.vlgmr.msra.gmra.mxu0 %v2409_v5  ;;  %2241 = vmatprep.subr.mxu1 %v1132_v23 }
 0x2cf   :  { %2242 = vmatpush3.msra.mxu1 %v1132_v23  ;;  %1984 = vmatprep.subr.mxu0 %v1354_v27 }
 0x2d0   :  { %2243 = vmatprep.subr.mxu1 %v1131_v24  ;;  %1985 = vmatpush3.msra.mxu0 %v1338_v28 }
 0x2d1   :  { %2244 = vmatpush3.msra.mxu1 %v1131_v24  ;;  %1986 = vmatprep.subr.mxu0 %v1353_v29  ;;  %v1369_v29 = vld [vmem:[#allocation5 + $0x8f0] sm:$0xff] }
 0x2d2   :  { %2245 = vmatprep.subr.mxu1 %v1130_v25  ;;  %1987 = vmatpush3.msra.mxu0 %v1337_v30 }
 0x2d3   :  { %2246 = vmatpush3.msra.mxu1 %v1130_v25  ;;  %1988 = vmatprep.subr.mxu0 %v1352_v47 }
 0x2d4   :  { %2247 = vmatprep.subr.mxu1 %v1129_v26  ;;  %1989 = vmatpush3.msra.mxu0 %v1336_v32 }
 0x2d5   :  { %2248 = vmatpush3.msra.mxu1 %v1129_v26  ;;  %1990 = vmatprep.subr.mxu0 %v1351_v33 }
 0x2d6   :  { %2255 = vmatprep.subr.mxu1 %v2500_v31  ;;  %1991 = vmatpush3.msra.mxu0 %v1335_v34 }
 0x2d7   :  { %1992 = vmatprep.subr.mxu0 %v1350_v54  ;;  %v1368_v54 = vld [vmem:[#allocation5 + $0x8e8] sm:$0xff] }
 0x2d8   :  { %1993 = vmatpush3.msra.mxu0 %v1334_v35 }
 0x2d9   :  { %1994 = vmatprep.subr.mxu0 %v1349_v36 }
 0x2da   :  { %1995 = vmatpush3.msra.mxu0 %v1333_v37  ;;  %v1367_v37 = vld [vmem:[#allocation5 + $0x8e0] sm:$0xff] }
 0x2db   :  { %1996 = vmatprep.subr.mxu0 %v1348_v38 }
 0x2dc   :  { %1997 = vmatpush3.msra.mxu0 %v1332_v39  ;;  %v1365_v39 = vld [vmem:[#allocation5 + $0x8d0] sm:$0xff] }
 0x2dd   :  { %1998 = vmatprep.subr.mxu0 %v1347_v40  ;;  %v1364_v40 = vld [vmem:[#allocation5 + $0x8c8] sm:$0xff] }
 0x2de   :  { %1999 = vmatpush3.msra.mxu0 %v1331_v41  ;;  %v1363_v41 = vld [vmem:[#allocation5 + $0x8c0] sm:$0xff] }
 0x2df   :  { %2000 = vmatprep.subr.mxu0 %v1346_v42  ;;  %v1362_v42 = vld [vmem:[#allocation5 + $0x8b8] sm:$0xff] }
 0x2e0   :  { %2001 = vmatpush3.msra.mxu0 %v1330_v43  ;;  %v1342_v43 = vld [vmem:[#allocation5 + $0x818] sm:$0xff] }
 0x2e1   :  { %2002 = vmatprep.subr.mxu0 %v1345_v44  ;;  %v1361_v44 = vld [vmem:[#allocation5 + $0x8b0] sm:$0xff] }
 0x2e2   :  { %2003 = vmatpush3.msra.mxu0 %v1329_v45  ;;  %v1326_v45 = vld [vmem:[#allocation5 + $0x798] sm:$0xff] }
 0x2e3   :  { %2004 = vmatprep.subr.mxu0 %v1344_v46  ;;  %v1341_v46 = vld [vmem:[#allocation5 + $0x810] sm:$0xff] }
 0x2e4   :  { %2005 = vmatpush3.msra.mxu0 %v1328_v48  ;;  %v1360_v48 = vld [vmem:[#allocation5 + $0x8a8] sm:$0xff] }
 0x2e5   :  { %2006 = vmatprep.subr.mxu0 %v1343_v49  ;;  %v1325_v49 = vld [vmem:[#allocation5 + $0x790] sm:$0xff] }
 0x2e6   :  { %2007 = vmatpush3.msra.mxu0 %v1327_v50  ;;  %v1340_v50 = vld [vmem:[#allocation5 + $0x808] sm:$0xff] }
 0x2e7   :  { %2008 = vmatprep.subr.mxu0 %v1342_v43  ;;  %v1545_v43 = vld [vmem:[#allocation5 + $0x918] sm:$0xff] }
 0x2e8   :  { %2009 = vmatpush3.msra.mxu0 %v1326_v45  ;;  %v1543_v45 = vld [vmem:[#allocation5 + $0x908] sm:$0xff] }
 0x2e9   :  { %2010 = vmatprep.subr.mxu0 %v1341_v46  ;;  %v1542_v46 = vld [vmem:[#allocation5 + $0x900] sm:$0xff] }
 0x2ea   :  { %2011 = vmatpush3.msra.mxu0 %v1325_v49 }
 0x2eb   :  { %2012 = vmatprep.subr.mxu0 %v1340_v50 }
 0x318   :  { %v1073_v63 = vpop.permute.xlu0 %1072 }
 0x319   :  { %v1085_v4 = vsel %vm1084_vm5, %v1073_v63, 0.0  ;;  %v1557_v63 = vld [vmem:[#allocation5 + $0x978] sm:$0xff] }
 0x31e   :  { %v1075_v13 = vpop.permute.xlu1 %1074 }
 0x31f   :  { %v1086_v19 = vsel %vm1084_vm5, %v1075_v13, 0.0 }
 0x323   :  { %v1077_v57 = vpop.permute.xlu0 %1076 }
 0x324   :  { %v1087_v28 = vsel %vm1084_vm5, %v1077_v57, 0.0 }
 0x327   :  { %v1079_v30 = vpop.permute.xlu1 %1078 }
 0x328   :  { %v1088_v35 = vsel %vm1084_vm5, %v1079_v30, 0.0 }
 0x36b   :  { %v1888_v52 = vpop.f32.mrf.mxu0 }
 0x36d   :  { %v1889_v58 = vpop.f32.mrf.mxu0 }
 0x36e   :  { %v1890_v59 = vadd.f32 %v1889_v58, %v1888_v52  ;;  %v2213_v60 = vpop.f32.mrf.mxu1  ;;  %v1324_v52 = vld [vmem:[#allocation5 + $0x788] sm:$0xff]  ;;  %v1358_v58 = vld [vmem:[#allocation5 + $0x898] sm:$0xff] }
 0x36f   :  { %2013 = vmatpush3.msra.mxu0 %v1324_v52 }
 0x370   :  { %v961_v61 = vadd.f32 %v1890_v59, %v893_v56  ;;  %v1045_v62 = vpop.f32.mrf.mxu1  ;;  %v1323_v59 = vld [vmem:[#allocation5 + $0x780] sm:$0xff] }
 0x372   :  { %v1046_v0 = vadd.f32 %v1045_v62, %v961_v61  ;;  %v1891_v1 = vpop.f32.mrf.mxu0  ;;  %v1356_v61 = vld [vmem:[#allocation5 + $0x888] sm:$0xff]  ;;  %v1355_v62 = vld [vmem:[#allocation5 + $0x880] sm:$0xff] }
 0x374   :  { %v1064_v2 = vmax.f32 %v1046_v0, 0.0  ;;  %v1892_v3 = vpop.f32.mrf.mxu0  ;;  %v1556_v0 = vld [vmem:[#allocation5 + $0x970] sm:$0xff] }
 0x375   :  { %v1893_v6 = vadd.f32 %v1892_v3, %v1891_v1  ;;  %v1555_v1 = vld [vmem:[#allocation5 + $0x968] sm:$0xff] }
 0x376   :  { %v1089_v7 = vadd.f32 %v1085_v4, %v1064_v2  ;;  %v1147_v4 = vsub.s32 4, %v2454_v55 }
 0x377   :  { %v1894_v8 = vpop.f32.mrf.mxu0  ;;  %v966_v9 = vadd.f32 %v1893_v6, %v893_v56  ;;  %v2216_v11 = vpop.f32.mrf.mxu1 }
 0x378   :  { %v1093_v10 = vmax.f32 %v1089_v7, 0.0  ;;  %v1148_v7 = vrot.slane %v2504_v53, %v1147_v4 }
 0x379   :  { %v1895_v12 = vpop.f32.mrf.mxu0  ;;  %v1051_v14 = vadd.f32 %v2213_v60, %v966_v9  ;;  %v1055_v20 = vpop.f32.mrf.mxu1  ;;  %v1357_v60 = vld [vmem:[#allocation5 + $0x890] sm:$0xff] }
 0x37a   :  { %v1896_v15 = vadd.f32 %v1895_v12, %v1894_v8  ;;  %1218 = vmatprep.mubr.f32.mxu0 %v1093_v10  ;;  %2249 = vmatprep.mubr.f32.mxu1 %v1093_v10 }
 0x37b   :  { %v1897_v16 = vpop.f32.mrf.mxu0  ;;  %v1065_v17 = vmax.f32 %v1051_v14, 0.0  ;;  %1219 = vmatmul.mubr.f32.gmra.mxu0 %v2409_v5 }
 0x37c   :  { %v971_v18 = vadd.f32 %v1896_v15, %v893_v56 }
 0x37d   :  { %v1898_v21 = vpop.f32.mrf.mxu0  ;;  %v1090_v24 = vadd.f32 %v1086_v19, %v1065_v17 }
 0x37e   :  { %v1056_v22 = vadd.f32 %v1055_v20, %v971_v18  ;;  %v1899_v23 = vadd.f32 %v1898_v21, %v1897_v16 }
 0x37f   :  { %v1094_v27 = vmax.f32 %v1090_v24, 0.0 }
 0x380   :  { %v1066_v25 = vmax.f32 %v1056_v22, 0.0  ;;  %v976_v26 = vadd.f32 %v1899_v23, %v893_v56  ;;  %v1339_v56 = vld [vmem:[#allocation5 + $0x800] sm:$0xff] }
 0x381   :  { %1223 = vmatprep.mubr.f32.mxu0 %v1094_v27  ;;  %2250 = vmatmul.mubr.f32.vlgmr.msra.gmra.mxu1 %v1094_v27 }
 0x382   :  { %v1091_v47 = vadd.f32 %v1087_v28, %v1066_v25  ;;  %v1061_v32 = vadd.f32 %v2216_v11, %v976_v26  ;;  %1224 = vmatmul.mubr.f32.gmra.mxu0 %v1093_v10  ;;  %2256 = vmatpush3.msra.mxu1 %v2500_v31  ;;  %v1366_v31 = vld [vmem:[#allocation5 + $0x8d8] sm:$0xff] }
 0x383   :  { %2257 = vmatprep.subr.mxu1 %v1369_v29  ;;  %2014 = vmatprep.subr.mxu0 %v1339_v56  ;;  %v1373_v56 = vsub.s32 5, %v2454_v55 }
 0x384   :  { %v1095_v33 = vmax.f32 %v1091_v47, 0.0  ;;  %v1067_v34 = vmax.f32 %v1061_v32, 0.0  ;;  %2258 = vmatpush3.msra.mxu1 %v1369_v29  ;;  %2015 = vmatpush3.msra.mxu0 %v1323_v59 }
 0x385   :  { %2259 = vmatprep.subr.mxu1 %v1368_v54  ;;  %2293 = vmatprep.subr.mxu0 %v2409_v5 }
 0x386   :  { %1228 = vmatprep.mubr.f32.mxu0 %v1095_v33  ;;  %2252 = vmatprep.mubr.f32.mxu1 %v1095_v33  ;;  %v2513_v36 = vadd.f32 %v1088_v35, %v1067_v34  ;;  %v1554_v34 = vld [vmem:[#allocation5 + $0x960] sm:$0xff]  ;;  %v1552_v35 = vld [vmem:[#allocation5 + $0x950] sm:$0xff] }
 0x387   :  { %1229 = vmatmul.mubr.f32.gmra.mxu0 %v1094_v27  ;;  %2260 = vmatpush3.msra.mxu1 %v1368_v54  ;;  %v1553_v54 = vld [vmem:[#allocation5 + $0x958] sm:$0xff] }
 0x388   :  { %v1096_v38 = vmax.f32 %v2513_v36, 0.0  ;;  %1439 = vmatprep.mubr.f32.mxu0 %v2409_v5  ;;  %2261 = vmatprep.subr.mxu1 %v1367_v37 }
 0x389   :  { %2262 = vmatpush3.msra.mxu1 %v1367_v37  ;;  %v1551_v37 = vld [vmem:[#allocation5 + $0x948] sm:$0xff] }
 0x38a   :  { %2253 = vmatmul.mubr.f32.gmra.mxu1 %v1096_v38  ;;  %2263 = vmatprep.subr.mxu1 %v1366_v31 }
 0x38b   :  { %2264 = vmatpush3.msra.mxu1 %v1366_v31  ;;  %1440 = vmatmul.mubr.f32.vlgmr.msra.gmra.mxu0 %v2409_v5  ;;  %v1550_v31 = vld [vmem:[#allocation5 + $0x940] sm:$0xff] }
 0x38c   :  { %2265 = vmatprep.subr.mxu1 %v1365_v39  ;;  %2294 = vmatpush3.msra.mxu0 %v1557_v63 }
 0x38d   :  { %2266 = vmatpush3.msra.mxu1 %v1365_v39  ;;  %2295 = vmatprep.subr.mxu0 %v2409_v5  ;;  %v1549_v39 = vld [vmem:[#allocation5 + $0x938] sm:$0xff] }
 0x38e   :  { %2267 = vmatprep.subr.mxu1 %v1364_v40  ;;  %2296 = vmatpush3.msra.mxu0 %v1556_v0  ;;  %v1952_v2 = vpop.f32.mrf.mxu0 }
 0x38f   :  { %2268 = vmatpush3.msra.mxu1 %v1364_v40  ;;  %2297 = vmatprep.subr.mxu0 %v2409_v5  ;;  %v1548_v40 = vld [vmem:[#allocation5 + $0x930] sm:$0xff] }
 0x390   :  { %2269 = vmatprep.subr.mxu1 %v1363_v41  ;;  %2298 = vmatpush3.msra.mxu0 %v1555_v1  ;;  %v1953_v3 = vpop.f32.mrf.mxu0 }
 0x391   :  { %2270 = vmatpush3.msra.mxu1 %v1363_v41  ;;  %2299 = vmatprep.subr.mxu0 %v2409_v5  ;;  %v1954_v9 = vadd.f32 %v1953_v3, %v1952_v2  ;;  %v1547_v41 = vld [vmem:[#allocation5 + $0x928] sm:$0xff] }
 0x392   :  { %2271 = vmatprep.subr.mxu1 %v1362_v42  ;;  %2300 = vmatpush3.msra.mxu0 %v1554_v34 }
 0x393   :  { %2272 = vmatpush3.msra.mxu1 %v1362_v42  ;;  %v1216_v14 = vadd.f32 %v1954_v9, %v1148_v7  ;;  %2301 = vmatprep.subr.mxu0 %v2409_v5  ;;  %v1546_v42 = vld [vmem:[#allocation5 + $0x920] sm:$0xff] }
 0x394   :  { %2273 = vmatprep.subr.mxu1 %v1361_v44  ;;  %2302 = vmatpush3.msra.mxu0 %v1553_v54 }
 0x395   :  { %2274 = vmatpush3.msra.mxu1 %v1361_v44  ;;  %2303 = vmatprep.subr.mxu0 %v2409_v5  ;;  %v1544_v44 = vld [vmem:[#allocation5 + $0x910] sm:$0xff] }
 0x396   :  { %2275 = vmatprep.subr.mxu1 %v1360_v48  ;;  %2304 = vmatpush3.msra.mxu0 %v1552_v35 }
 0x397   :  { %2276 = vmatpush3.msra.mxu1 %v1360_v48  ;;  %2305 = vmatprep.subr.mxu0 %v2409_v5 }
 0x398   :  { %2277 = vmatprep.subr.mxu1 %v1359_v51  ;;  %2306 = vmatpush3.msra.mxu0 %v1551_v37 }
 0x399   :  { %2278 = vmatpush3.msra.mxu1 %v1359_v51  ;;  %2307 = vmatprep.subr.mxu0 %v2409_v5 }
 0x39a   :  { %2279 = vmatprep.subr.mxu1 %v1358_v58  ;;  %2308 = vmatpush3.msra.mxu0 %v1550_v31 }
 0x39b   :  { %2280 = vmatpush3.msra.mxu1 %v1358_v58  ;;  %2309 = vmatprep.subr.mxu0 %v2409_v5 }
 0x39c   :  { %2281 = vmatprep.subr.mxu1 %v1357_v60  ;;  %2310 = vmatpush3.msra.mxu0 %v1549_v39 }
 0x39d   :  { %2282 = vmatpush3.msra.mxu1 %v1357_v60  ;;  %2311 = vmatprep.subr.mxu0 %v2409_v5 }
 0x39e   :  { %2283 = vmatprep.subr.mxu1 %v1356_v61  ;;  %2312 = vmatpush3.msra.mxu0 %v1548_v40 }
 0x39f   :  { %2284 = vmatpush3.msra.mxu1 %v1356_v61  ;;  %2313 = vmatprep.subr.mxu0 %v2409_v5  ;;  %v1374_v61 = vrot.slane %v2504_v53, %v1373_v56 }
 0x3a0   :  { %2285 = vmatprep.subr.mxu1 %v1355_v62  ;;  %2314 = vmatpush3.msra.mxu0 %v1547_v41 }
 0x3a1   :  { %2286 = vmatpush3.msra.mxu1 %v1355_v62  ;;  %2315 = vmatprep.subr.mxu0 %v2409_v5 }
 0x3a2   :  { %2316 = vmatpush3.msra.mxu0 %v1546_v42 }
 0x3a3   :  { %2317 = vmatprep.subr.mxu0 %v2409_v5 }
 0x3a4   :  { %2318 = vmatpush3.msra.mxu0 %v1545_v43 }
 0x3a5   :  { %2319 = vmatprep.subr.mxu0 %v2409_v5 }
 0x3a6   :  { %2320 = vmatpush3.msra.mxu0 %v1544_v44 }
 0x3a7   :  { %2321 = vmatprep.subr.mxu0 %v2409_v5 }
 0x3a8   :  { %2322 = vmatpush3.msra.mxu0 %v1543_v45 }
 0x3a9   :  { %2323 = vmatprep.subr.mxu0 %v2409_v5 }
 0x3aa   :  { %2324 = vmatpush3.msra.mxu0 %v1542_v46 }
 0x43b   :  { %v1955_v6 = vpop.f32.mrf.mxu0 }
 0x43d   :  { %v1956_v8 = vpop.f32.mrf.mxu0 }
 0x43e   :  { %v1957_v10 = vadd.f32 %v1956_v8, %v1955_v6 }
 0x440   :  { %v1221_v11 = vadd.f32 %v1957_v10, %v1148_v7 }
 0x441   :  { %v2251_v12 = vpop.f32.mrf.mxu1 }
 0x442   :  { %v1958_v13 = vpop.f32.mrf.mxu0  ;;  %v1306_v15 = vadd.f32 %v2251_v12, %v1221_v11 }
 0x443   :  { %v1300_v16 = vpop.f32.mrf.mxu1 }
 0x444   :  { %v1301_v17 = vadd.f32 %v1300_v16, %v1216_v14  ;;  %v1959_v18 = vpop.f32.mrf.mxu0  ;;  %v1320_v57 = vmax.f32 %v1306_v15, 0.0 }
 0x445   :  { %v1960_v20 = vadd.f32 %v1959_v18, %v1958_v13 }
 0x446   :  { %v1319_v19 = vmax.f32 %v1301_v17, 0.0 }
 0x447   :  { %v1961_v21 = vpop.f32.mrf.mxu0  ;;  %v1226_v25 = vadd.f32 %v1960_v20, %v1148_v7 }
 0x448   :  { %1443 = vmatprep.mubr.f32.mxu0 %v1319_v19  ;;  %2287 = vmatprep.mubr.f32.mxu1 %v1319_v19 }
 0x449   :  { %v1962_v22 = vpop.f32.mrf.mxu0  ;;  %1444 = vmatmul.mubr.f32.gmra.mxu0 %v2409_v5  ;;  %2288 = vmatmul.mubr.f32.vlgmr.msra.gmra.mxu1 %v1320_v57 }
 0x44a   :  { %v1963_v23 = vadd.f32 %v1962_v22, %v1961_v21  ;;  %v2254_v24 = vpop.f32.mrf.mxu1  ;;  %1447 = vmatprep.mubr.f32.mxu0 %v1320_v57 }
 0x44b   :  { %v2016_v32 = vpop.f32.mrf.mxu0 }
 0x44c   :  { %v1231_v26 = vadd.f32 %v1963_v23, %v1148_v7  ;;  %v1310_v27 = vpop.f32.mrf.mxu1  ;;  %v1560_v7 = vsub.s32 6, %v2454_v55 }
 0x44d   :  { %v1311_v28 = vadd.f32 %v1310_v27, %v1226_v25  ;;  %1448 = vmatmul.mubr.f32.gmra.mxu0 %v1319_v19  ;;  %v2017_v33 = vpop.f32.mrf.mxu0 }
 0x44e   :  { %v1316_v29 = vadd.f32 %v2254_v24, %v1231_v26  ;;  %v1561_v8 = vrot.slane %v2504_v53, %v1560_v7 }
 0x44f   :  { %v1321_v30 = vmax.f32 %v1311_v28, 0.0 }
 0x450   :  { %v1322_v47 = vmax.f32 %v1316_v29, 0.0 }
 0x451   :  { %1451 = vmatprep.mubr.f32.mxu0 %v1321_v30  ;;  %2290 = vmatprep.mubr.f32.mxu1 %v1321_v30 }
 0x452   :  { %1452 = vmatmul.mubr.f32.gmra.mxu0 %v1320_v57  ;;  %2291 = vmatmul.mubr.f32.gmra.mxu1 %v1322_v47 }
 0x453   :  { %2325 = vmatprep.mubr.msk.f32.mxu0 %vm2411_vm6, %v2409_v5 }
 0x509   :  { %v2019_v48 = vpop.f32.mrf.mxu0  ;;  %v2289_v49 = vpop.f32.mrf.mxu1 }
 0x50b   :  { %v2020_v50 = vpop.f32.mrf.mxu0  ;;  %v1523_v51 = vpop.f32.mrf.mxu1 }
 0x50d   :  { %v2022_v52 = vpop.f32.mrf.mxu0 }
 0x50f   :  { %v2023_v58 = vpop.f32.mrf.mxu0 }
 0x512   :  { %v2025_v59 = vpop.f32.mrf.mxu0  ;;  %v2292_v60 = vpop.f32.mrf.mxu1 }
 0x514   :  { %v2026_v62 = vpop.f32.mrf.mxu0  ;;  %v1531_v63 = vpop.f32.mrf.mxu1 }
 0x515   :  { %v2027_v0 = vadd.f32 %v2026_v62, %v2025_v59 }
 0x517   :  { %v1454_v1 = vadd.f32 %v2027_v0, %v1374_v61 }
 0x519   :  { %v1536_v2 = vadd.f32 %v2292_v60, %v1454_v1 }
 0x51b   :  { %v1539_v3 = vmax.f32 %v1536_v2, 0.0 }
 0x51d   :  { %v1540_v5 = vadd.f32 %v1539_v3, %v1096_v38 }
 0x51f   :  { %v1541_v4 = vmax.f32 %v1540_v5, 0.0 }
 0x521   :  { %v1563_v6 = vrot.slane %v1541_v4, 6 }
 0x523   :  { %2326 = vmatmul.mubr.f32.vlgmr.msra.gmra.mxu0 %v1563_v6 }
 0x5e3   :  { %v1631_v9 = vpop.f32.mrf.mxu0 }
 0x5e4   :  { %v1632_v10 = vadd.f32 %v1631_v9, %v1561_v8 }
 0x5e5   :  { %v2327_v11 = vpop.f32.mrf.mxu0 }
 0x5e6   :  { %1635 = vst [vmem:[#allocation7] sm:$0x3] %v1632_v10 }
 0x5e7   :  { %2389 = shalt.err (!%p2386_p0)
}
 0x5e8   :  { %1645 = dma.vmem_to_hbm [thread:$0]  %s1643_s22, 32, %s2551_s2, [#allocation4]  }
 0x5e9   :  { %2402 = dma.done.wait [#allocation4], 32  }
 0x5ea   :  { %2403 = vsyncadd [#allocation4], 4294967264 }
 0x5eb   :  { %1649 = vsyncpa [#allocation3], 1 }
 0x5ec   :  { %1650 = vsyncpa [#allocation6], 1 }
 0x5ed   :  { %1651 = vsyncpa [#allocation4], 1 }

</bundles_post_ra>
